<compile_context>
chip_gen: v5e
topology: v5e:2x2
jax: 0.10.0
libtpu: 0.0.40
codegen_flags: <defaults>
</compile_context>

<pallas_src>
import functools

import jax
import jax.numpy as jnp
from jax.experimental import pallas as pl
from jax.experimental.pallas import tpu as pltpu


def _round_up(x, m):
    return ((x + m - 1) // m) * m


def _composite_deformer_kernel(ps_ref, b1e_ref, w1p_ref, w2_ref, b2_ref,
                               out_ref, *, num_deformers, point_dim):
    # ps_ref  : (1, D, TP)  channels-first point tile for one batch element
    # b1e_ref : (1, H, N)   effective first-layer bias (cond term folded in)
    # w1p_ref : (N, H, D)   first-layer weights acting on point coords (f32)
    # w2_ref  : (N, D, H)   second-layer weights, pre-cast to bf16
    # b2_ref  : (D, N)      second-layer bias, transposed for (D,1) columns
    out = ps_ref[0].astype(jnp.float32)            # (D, TP)
    b1e = b1e_ref[0].astype(jnp.float32)           # (H, N)
    b2 = b2_ref[...].astype(jnp.float32)           # (D, N)

    # Sequential composition: deformer i consumes the output of deformer i-1.
    for i in range(num_deformers):                 # static, unrolled (N small)
        w1p = w1p_ref[i].astype(jnp.float32)       # (H, D)

        # ---- Layer 1 on the VPU: K = D (=3) is far too small for the MXU.
        # h = relu(W1p @ out + b1_eff) == relu(sum_d w1p[:,d] (x) out[d,:] + b)
        h = b1e[:, i:i + 1] + w1p[:, 0:1] * out[0:1, :]          # (H, TP)
        for d in range(1, point_dim):              # static, point_dim == 3
            h = h + w1p[:, d:d + 1] * out[d:d + 1, :]
        h = jnp.maximum(h, 0.0)
        # TODO(synk): on v5e, slab-wise fusion (fori_loop over TP/128) would
        # keep h in vregs and avoid the single-store-slot pressure.

        # ---- Layer 2 on the MXU with bf16 operands, f32 accumulation.
        delta = jnp.dot(w2_ref[i], h.astype(jnp.bfloat16),
                        preferred_element_type=jnp.float32)      # (D, TP)

        out = out + delta + b2[:, i:i + 1]                       # residual, f32

    out_ref[0] = out.astype(out_ref.dtype)


def composite_deformer(ps, conds, w1, b1, w2, b2, *, tile_p=4096,
                       channels_first=False):
    """Composite of N conditional-MLP residual deformers.

    ps   : (B, P, D) points, or (B, D, P) if channels_first=True
    conds: (B, N, C) per-deformer conditions
    w1   : (N, H, D + C)  first-layer weights (PyTorch Linear out x in layout)
    b1   : (N, H);  w2: (N, D, H);  b2: (N, D)
    """
    if channels_first:
        B, D, P = ps.shape
        ps_cf = ps                                 # already (B, D, P)
    else:
        B, P, D = ps.shape
        ps_cf = jnp.transpose(ps, (0, 2, 1))       # (B, D, P): points on lanes
    _, N, C = conds.shape
    H = w1.shape[1]

    # --- Tile-size selection (lane axis = points).
    tile_p = _round_up(max(int(tile_p), 128), 128)
    tp = min(tile_p, _round_up(P, 128))
    if B == 1 and P > 128:
        # v7x has two TensorCores: keep >= 2 parallel grid steps when B == 1.
        tp = min(tp, _round_up((P + 1) // 2, 128))
    P_pad = _round_up(P, tp)
    if P_pad != P:
        ps_cf = jnp.pad(ps_cf, ((0, 0), (0, 0), (0, P_pad - P)))

    # --- Hoist the condition term: b1_eff[b,:,i] = W1c[i] @ conds[b,i] + b1[i].
    w1p = w1[:, :, :D]                              # (N, H, D)
    w1c = w1[:, :, D:]                              # (N, H, C)
    b1_eff = (jnp.einsum("nhc,bnc->bhn", w1c, conds,
                         precision=jax.lax.Precision.HIGHEST)
              + jnp.transpose(b1, (1, 0))[None])    # (B, H, N)
    b2_t = jnp.transpose(b2, (1, 0))                # (D, N)
    w2_bf = w2.astype(jnp.bfloat16)                 # bf16 MXU operands

    grid = (B, P_pad // tp)
    kernel = functools.partial(_composite_deformer_kernel,
                               num_deformers=N, point_dim=D)

    out_cf = pl.pallas_call(
        kernel,
        out_shape=jax.ShapeDtypeStruct((B, D, P_pad), ps.dtype),
        grid=grid,
        in_specs=[
            pl.BlockSpec((1, D, tp), lambda b, p: (b, 0, p)),   # ps (cf)
            pl.BlockSpec((1, H, N), lambda b, p: (b, 0, 0)),    # b1_eff
            pl.BlockSpec((N, H, D), lambda b, p: (0, 0, 0)),    # w1p (resident)
            pl.BlockSpec((N, D, H), lambda b, p: (0, 0, 0)),    # w2 (resident)
            pl.BlockSpec((D, N), lambda b, p: (0, 0)),          # b2^T (resident)
        ],
        out_specs=pl.BlockSpec((1, D, tp), lambda b, p: (b, 0, p)),
        input_output_aliases={0: 0},                # donate ps_cf buffer
        compiler_params=pltpu.CompilerParams(
            dimension_semantics=("parallel", "parallel")),
    )(ps_cf, b1_eff, w1p, w2_bf, b2_t)

    out_cf = out_cf[:, :, :P]
    if channels_first:
        return out_cf
    return jnp.transpose(out_cf, (0, 2, 1))        # (B, P, D)


def composite_deformer_reference(ps, conds, w1, b1, w2, b2, *,
                                 matmul2_dtype=jnp.float32):
    """Pure-JAX reference mirroring the PyTorch loop:
       out = ps; for cond, deformer in zip(conds, defs): out = deformer(out, cond)
    `matmul2_dtype=jnp.bfloat16` reproduces the kernel's bf16 second GEMM."""
    B, P, D = ps.shape
    N = conds.shape[1]
    out = ps.astype(jnp.float32)
    for i in range(N):
        c = conds[:, i, :]                                        # (B, C)
        c_b = jnp.broadcast_to(c[:, None, :], (B, P, c.shape[-1]))
        x = jnp.concatenate([out, c_b], axis=-1)                  # (B, P, D+C)
        h = jax.nn.relu(jnp.einsum("bpi,hi->bph", x, w1[i],
                                   precision=jax.lax.Precision.HIGHEST) + b1[i])
        delta = jnp.einsum("bph,dh->bpd",
                           h.astype(matmul2_dtype), w2[i].astype(matmul2_dtype),
                           precision=jax.lax.Precision.HIGHEST,
                           preferred_element_type=jnp.float32)
        out = out + delta + b2[i]
    return out.astype(ps.dtype)


if __name__ == "__main__":
    # Small, deterministic problem: N=2 chained deformers.
    B, P, D = 2, 1024, 3         # batch, points, point dim
    C, H, N = 8, 32, 2           # cond dim, hidden dim, number of deformers

    key = jax.random.PRNGKey(0)
    k_ps, k_c, k_w1, k_b1, k_w2, k_b2 = jax.random.split(key, 6)

    ps = jax.random.normal(k_ps, (B, P, D), dtype=jnp.float32)
    conds = jax.random.normal(k_c, (B, N, C), dtype=jnp.float32)

    # Deterministic parameter init (PyTorch nn.Linear-like scaling).
    w1 = jax.random.uniform(k_w1, (N, H, D + C), jnp.float32,
                            -1.0, 1.0) / jnp.sqrt(D + C)
    b1 = jax.random.uniform(k_b1, (N, H), jnp.float32,
                            -1.0, 1.0) / jnp.sqrt(D + C)
    w2 = jax.random.uniform(k_w2, (N, D, H), jnp.float32,
                            -1.0, 1.0) / jnp.sqrt(H)
    b2 = jax.random.uniform(k_b2, (N, D), jnp.float32,
                            -1.0, 1.0) / jnp.sqrt(H)

    run = jax.jit(composite_deformer,
                  static_argnames=("tile_p", "channels_first"))
    out = jax.block_until_ready(run(ps, conds, w1, b1, w2, b2))
    assert out.shape == ps.shape and out.dtype == ps.dtype

    # (a) Reference with the same bf16 second-layer GEMM (tight tolerance):
    #     only difference is f32 ordering / rare bf16 rounding-boundary flips.
    ref_bf16 = composite_deformer_reference(ps, conds, w1, b1, w2, b2,
                                            matmul2_dtype=jnp.bfloat16)
    assert jnp.allclose(out, ref_bf16, atol=1e-2, rtol=1e-3), (
        float(jnp.max(jnp.abs(out - ref_bf16))))

    # (b) Full-f32 reference (loose tolerance: kernel's second GEMM uses bf16
    #     operands with f32 accumulation, as recommended for MXU efficiency).
    ref_f32 = composite_deformer_reference(ps, conds, w1, b1, w2, b2)
    assert jnp.allclose(out, ref_f32, atol=5e-2, rtol=1e-2), (
        float(jnp.max(jnp.abs(out - ref_f32))))

    # Channels-first API path (skips both wrapper transposes); same math.
    out_cf = run(jnp.transpose(ps, (0, 2, 1)), conds, w1, b1, w2, b2,
                 channels_first=True)
    assert jnp.allclose(jnp.transpose(out_cf, (0, 2, 1)), out, atol=1e-5)

    print("KERNEL_OK")
</pallas_src>

<mosaic_0001>
module attributes {stable_mosaic.version = 11 : i64} {
  func.func @_composite_deformer_kernel(%arg0: i32, %arg1: i32, %arg2: memref<1x3x1024xf32, #tpu.memory_space<vmem>>, %arg3: memref<1x32x2xf32, #tpu.memory_space<vmem>>, %arg4: memref<2x32x3xf32, #tpu.memory_space<vmem>>, %arg5: memref<2x3x32xbf16, #tpu.memory_space<vmem>>, %arg6: memref<3x2xf32, #tpu.memory_space<vmem>>, %arg7: memref<1x3x1024xf32, #tpu.memory_space<vmem>>) attributes {dimension_semantics = [#tpu.dimension_semantics<parallel>, #tpu.dimension_semantics<parallel>], iteration_bounds = array<i64: 2, 1>, scalar_prefetch = 0 : i64, scratch_operands = 0 : i64, tpu.core_type = #tpu.core_type<tc>, window_params = [{transform_indices = @transform_0, window_bounds = array<i64: 1, 3, 1024>}, {transform_indices = @transform_1, window_bounds = array<i64: 1, 32, 2>}, {pipeline_mode = #tpu.pipeline_mode<synchronous>, transform_indices = @transform_2, window_bounds = array<i64: 2, 32, 3>}, {pipeline_mode = #tpu.pipeline_mode<synchronous>, transform_indices = @transform_3, window_bounds = array<i64: 2, 3, 32>}, {pipeline_mode = #tpu.pipeline_mode<synchronous>, transform_indices = @transform_4, window_bounds = array<i64: 3, 2>}, {transform_indices = @transform_5, window_bounds = array<i64: 1, 3, 1024>}]} {
    %c0 = arith.constant 0 : index
    %c0_0 = arith.constant 0 : index
    %c0_1 = arith.constant 0 : index
    %0 = vector.load %arg2[%c0, %c0_0, %c0_1] : memref<1x3x1024xf32, #tpu.memory_space<vmem>>, vector<1x3x1024xf32>
    %1 = vector.shape_cast %0 : vector<1x3x1024xf32> to vector<3x1024xf32>
    %c0_2 = arith.constant 0 : index
    %c0_3 = arith.constant 0 : index
    %c0_4 = arith.constant 0 : index
    %2 = vector.load %arg3[%c0_2, %c0_3, %c0_4] : memref<1x32x2xf32, #tpu.memory_space<vmem>>, vector<1x32x2xf32>
    %3 = vector.shape_cast %2 : vector<1x32x2xf32> to vector<32x2xf32>
    %c0_5 = arith.constant 0 : index
    %c0_6 = arith.constant 0 : index
    %4 = vector.load %arg6[%c0_5, %c0_6] : memref<3x2xf32, #tpu.memory_space<vmem>>, vector<3x2xf32>
    %c0_7 = arith.constant 0 : index
    %c0_8 = arith.constant 0 : index
    %c0_9 = arith.constant 0 : index
    %5 = vector.load %arg4[%c0_7, %c0_8, %c0_9] : memref<2x32x3xf32, #tpu.memory_space<vmem>>, vector<1x32x3xf32>
    %6 = vector.shape_cast %5 : vector<1x32x3xf32> to vector<32x3xf32>
    %7 = vector.extract_strided_slice %3 {offsets = [0, 0], sizes = [32, 1], strides = [1, 1]} : vector<32x2xf32> to vector<32x1xf32>
    %8 = vector.extract_strided_slice %6 {offsets = [0, 0], sizes = [32, 1], strides = [1, 1]} : vector<32x3xf32> to vector<32x1xf32>
    %9 = vector.extract_strided_slice %1 {offsets = [0, 0], sizes = [1, 1024], strides = [1, 1]} : vector<3x1024xf32> to vector<1x1024xf32>
    %10 = vector.broadcast %8 : vector<32x1xf32> to vector<32x1024xf32>
    %11 = vector.broadcast %9 : vector<1x1024xf32> to vector<32x1024xf32>
    %12 = arith.mulf %10, %11 : vector<32x1024xf32>
    %13 = vector.broadcast %7 : vector<32x1xf32> to vector<32x1024xf32>
    %14 = arith.addf %13, %12 : vector<32x1024xf32>
    %15 = vector.extract_strided_slice %6 {offsets = [0, 1], sizes = [32, 1], strides = [1, 1]} : vector<32x3xf32> to vector<32x1xf32>
    %16 = vector.extract_strided_slice %1 {offsets = [1, 0], sizes = [1, 1024], strides = [1, 1]} : vector<3x1024xf32> to vector<1x1024xf32>
    %17 = vector.broadcast %15 : vector<32x1xf32> to vector<32x1024xf32>
    %18 = vector.broadcast %16 : vector<1x1024xf32> to vector<32x1024xf32>
    %19 = arith.mulf %17, %18 : vector<32x1024xf32>
    %20 = arith.addf %14, %19 : vector<32x1024xf32>
    %21 = vector.extract_strided_slice %6 {offsets = [0, 2], sizes = [32, 1], strides = [1, 1]} : vector<32x3xf32> to vector<32x1xf32>
    %22 = vector.extract_strided_slice %1 {offsets = [2, 0], sizes = [1, 1024], strides = [1, 1]} : vector<3x1024xf32> to vector<1x1024xf32>
    %23 = vector.broadcast %21 : vector<32x1xf32> to vector<32x1024xf32>
    %24 = vector.broadcast %22 : vector<1x1024xf32> to vector<32x1024xf32>
    %25 = arith.mulf %23, %24 : vector<32x1024xf32>
    %26 = arith.addf %20, %25 : vector<32x1024xf32>
    %cst = arith.constant 0.000000e+00 : f32
    %27 = vector.broadcast %cst : f32 to vector<32x1024xf32>
    %28 = arith.maximumf %26, %27 : vector<32x1024xf32>
    %c0_10 = arith.constant 0 : index
    %c0_11 = arith.constant 0 : index
    %c0_12 = arith.constant 0 : index
    %29 = vector.load %arg5[%c0_10, %c0_11, %c0_12] : memref<2x3x32xbf16, #tpu.memory_space<vmem>>, vector<1x3x32xbf16>
    %30 = vector.shape_cast %29 : vector<1x3x32xbf16> to vector<3x32xbf16>
    %31 = arith.truncf %28 : vector<32x1024xf32> to vector<32x1024xbf16>
    %cst_13 = arith.constant dense<0.000000e+00> : vector<3x1024xf32>
    %32 = tpu.matmul %30, %31, %cst_13 {dimension_numbers = #tpu.dot_dimension_numbers<[1], [0], [0], [1], [0, 0, 1, 1], [], []>} : vector<3x32xbf16>, vector<32x1024xbf16>, vector<3x1024xf32> -> vector<3x1024xf32>
    %33 = arith.addf %1, %32 : vector<3x1024xf32>
    %34 = vector.extract_strided_slice %4 {offsets = [0, 0], sizes = [3, 1], strides = [1, 1]} : vector<3x2xf32> to vector<3x1xf32>
    %35 = vector.broadcast %34 : vector<3x1xf32> to vector<3x1024xf32>
    %36 = arith.addf %33, %35 : vector<3x1024xf32>
    %c1 = arith.constant 1 : index
    %c0_14 = arith.constant 0 : index
    %c0_15 = arith.constant 0 : index
    %37 = vector.load %arg4[%c1, %c0_14, %c0_15] : memref<2x32x3xf32, #tpu.memory_space<vmem>>, vector<1x32x3xf32>
    %38 = vector.shape_cast %37 : vector<1x32x3xf32> to vector<32x3xf32>
    %39 = vector.extract_strided_slice %3 {offsets = [0, 1], sizes = [32, 1], strides = [1, 1]} : vector<32x2xf32> to vector<32x1xf32>
    %40 = vector.extract_strided_slice %38 {offsets = [0, 0], sizes = [32, 1], strides = [1, 1]} : vector<32x3xf32> to vector<32x1xf32>
    %41 = vector.extract_strided_slice %36 {offsets = [0, 0], sizes = [1, 1024], strides = [1, 1]} : vector<3x1024xf32> to vector<1x1024xf32>
    %42 = vector.broadcast %40 : vector<32x1xf32> to vector<32x1024xf32>
    %43 = vector.broadcast %41 : vector<1x1024xf32> to vector<32x1024xf32>
    %44 = arith.mulf %42, %43 : vector<32x1024xf32>
    %45 = vector.broadcast %39 : vector<32x1xf32> to vector<32x1024xf32>
    %46 = arith.addf %45, %44 : vector<32x1024xf32>
    %47 = vector.extract_strided_slice %38 {offsets = [0, 1], sizes = [32, 1], strides = [1, 1]} : vector<32x3xf32> to vector<32x1xf32>
    %48 = vector.extract_strided_slice %36 {offsets = [1, 0], sizes = [1, 1024], strides = [1, 1]} : vector<3x1024xf32> to vector<1x1024xf32>
    %49 = vector.broadcast %47 : vector<32x1xf32> to vector<32x1024xf32>
    %50 = vector.broadcast %48 : vector<1x1024xf32> to vector<32x1024xf32>
    %51 = arith.mulf %49, %50 : vector<32x1024xf32>
    %52 = arith.addf %46, %51 : vector<32x1024xf32>
    %53 = vector.extract_strided_slice %38 {offsets = [0, 2], sizes = [32, 1], strides = [1, 1]} : vector<32x3xf32> to vector<32x1xf32>
    %54 = vector.extract_strided_slice %36 {offsets = [2, 0], sizes = [1, 1024], strides = [1, 1]} : vector<3x1024xf32> to vector<1x1024xf32>
    %55 = vector.broadcast %53 : vector<32x1xf32> to vector<32x1024xf32>
    %56 = vector.broadcast %54 : vector<1x1024xf32> to vector<32x1024xf32>
    %57 = arith.mulf %55, %56 : vector<32x1024xf32>
    %58 = arith.addf %52, %57 : vector<32x1024xf32>
    %cst_16 = arith.constant 0.000000e+00 : f32
    %59 = vector.broadcast %cst_16 : f32 to vector<32x1024xf32>
    %60 = arith.maximumf %58, %59 : vector<32x1024xf32>
    %c1_17 = arith.constant 1 : index
    %c0_18 = arith.constant 0 : index
    %c0_19 = arith.constant 0 : index
    %61 = vector.load %arg5[%c1_17, %c0_18, %c0_19] : memref<2x3x32xbf16, #tpu.memory_space<vmem>>, vector<1x3x32xbf16>
    %62 = vector.shape_cast %61 : vector<1x3x32xbf16> to vector<3x32xbf16>
    %63 = arith.truncf %60 : vector<32x1024xf32> to vector<32x1024xbf16>
    %cst_20 = arith.constant dense<0.000000e+00> : vector<3x1024xf32>
    %64 = tpu.matmul %62, %63, %cst_20 {dimension_numbers = #tpu.dot_dimension_numbers<[1], [0], [0], [1], [0, 0, 1, 1], [], []>} : vector<3x32xbf16>, vector<32x1024xbf16>, vector<3x1024xf32> -> vector<3x1024xf32>
    %65 = arith.addf %36, %64 : vector<3x1024xf32>
    %66 = vector.extract_strided_slice %4 {offsets = [0, 1], sizes = [3, 1], strides = [1, 1]} : vector<3x2xf32> to vector<3x1xf32>
    %67 = vector.broadcast %66 : vector<3x1xf32> to vector<3x1024xf32>
    %68 = arith.addf %65, %67 : vector<3x1024xf32>
    %c0_21 = arith.constant 0 : index
    %c0_22 = arith.constant 0 : index
    %c0_23 = arith.constant 0 : index
    %69 = vector.load %arg7[%c0_21, %c0_22, %c0_23] : memref<1x3x1024xf32, #tpu.memory_space<vmem>>, vector<1x3x1024xf32>
    %70 = vector.shape_cast %69 : vector<1x3x1024xf32> to vector<3x1024xf32>
    %71 = vector.shape_cast %68 : vector<3x1024xf32> to vector<1x3x1024xf32>
    tpu.vector_store %arg7[%c0_21, %c0_22, %c0_23], %71 {strides = array<i32>} : memref<1x3x1024xf32, #tpu.memory_space<vmem>>, vector<1x3x1024xf32>,
    return
  }
  func.func @transform_0(%arg0: i32, %arg1: i32) -> (i32, i32, i32) {
    %c0_i32 = arith.constant 0 : i32
    %c0_i32_0 = arith.constant 0 : i32
    return %arg0, %c0_i32, %arg1 : i32, i32, i32
  }
  func.func @transform_1(%arg0: i32, %arg1: i32) -> (i32, i32, i32) {
    %c0_i32 = arith.constant 0 : i32
    %c0_i32_0 = arith.constant 0 : i32
    %c0_i32_1 = arith.constant 0 : i32
    return %arg0, %c0_i32, %c0_i32_0 : i32, i32, i32
  }
  func.func @transform_2(%arg0: i32, %arg1: i32) -> (i32, i32, i32) {
    %c0_i32 = arith.constant 0 : i32
    %c0_i32_0 = arith.constant 0 : i32
    %c0_i32_1 = arith.constant 0 : i32
    %c0_i32_2 = arith.constant 0 : i32
    return %c0_i32, %c0_i32_0, %c0_i32_1 : i32, i32, i32
  }
  func.func @transform_3(%arg0: i32, %arg1: i32) -> (i32, i32, i32) {
    %c0_i32 = arith.constant 0 : i32
    %c0_i32_0 = arith.constant 0 : i32
    %c0_i32_1 = arith.constant 0 : i32
    %c0_i32_2 = arith.constant 0 : i32
    return %c0_i32, %c0_i32_0, %c0_i32_1 : i32, i32, i32
  }
  func.func @transform_4(%arg0: i32, %arg1: i32) -> (i32, i32) {
    %c0_i32 = arith.constant 0 : i32
    %c0_i32_0 = arith.constant 0 : i32
    %c0_i32_1 = arith.constant 0 : i32
    return %c0_i32, %c0_i32_0 : i32, i32
  }
  func.func @transform_5(%arg0: i32, %arg1: i32) -> (i32, i32, i32) {
    %c0_i32 = arith.constant 0 : i32
    %c0_i32_0 = arith.constant 0 : i32
    return %arg0, %c0_i32, %arg1 : i32, i32, i32
  }
}

</mosaic_0001>

<bundles_post_ra>
// kernel: composite_deformer.1
= control target key start
LH: loop header
LB: loop body
LE: loop exit
PB: predicated region body
PF: predicated region fallthrough
CT: control target
= control target key end

     0   :  { %s1616_s18 = smov 0   ;;  %s1618_s19 = smov 0   ;;  %s2435_s0 = inlined_call_operand.vmem [shape: f32[2,3,1024], index: 0, kind: input, shape index: {}, may-alias: {0,5}]   ;;  %s2436_s1 = inlined_call_operand.vmem [shape: f32[2,32,2], index: 1, kind: input, shape index: {}]   ;;  %s2437_s2 = inlined_call_operand.vmem [shape: f32[2,32,3], index: 2, kind: input, shape index: {}]   ;;  %s2438_s3 = inlined_call_operand.vmem [shape: bf16[2,3,32], index: 3, kind: input, shape index: {}]   ;;  %s2439_s4 = inlined_call_operand.vmem [shape: f32[3,2], index: 4, kind: input, shape index: {}]   ;;  %s2440_s5 = inlined_call_operand.vmem [shape: f32[2,3,1024], index: 5, kind: output, shape index: {}, may-alias: {0,5}]  }
   0x1   :  { %s1620_s20 = smov 0  }
   0x2 LB: > { %s27_s21 = sadd.s32 1, %s1576_s19  ;;  %p1474_p0 = scmp.ge.s32.totalorder %s1580_s20, 1  ;;  %s1580_s20 = sphi %s1620_s20, %s15_s20   ;;  %s1576_s19 = sphi %s1618_s19, %s2554_s19   ;;  %s1572_s18 = sphi %s1616_s18, %s2553_s18  }
   0x3   : > { %p29_p1 = scmp.ge.s32.totalorder %s27_s21, 2  ;;  %p218_p2 = scmp.lt.s32.totalorder %s1580_s20, 3 }
   0x5   : > { %s2556_s21 = smov (%p29_p1, %s27_s21), 0  ;;  %p219_p3 = pnand %p1474_p0, %p218_p2 }
   0x7   : > { %222 = sbr.rel (%p219_p3) target bundleno = 546 (0x222), region = 40 }
   0xc   : > { %v296_v0 = vld [vmem:[%s2437_s2 + $0x10] sm:$0xff]  ;;  %p260_p4 = scmp.lt.s32.totalorder %s1572_s18, 1  ;;  %v2443_v1 = vmov 0   ;;  %v2445_v2 = vmov 1   ;;  %v297_v4 = vld [vmem:[%s2437_s2 + $0x18] sm:$0xff]  ;;  %v294_v6 = vld [vmem:[%s2437_s2] sm:$0xff] }
   0xd   : > { %1535 = vset.pattern.permute.xlu0 %v2443_v1  ;;  %1536 = vset.pattern.permute.xlu1 %v2443_v1  ;;  %v2441_v7 = vmov 2   ;;  %v295_v8 = vld [vmem:[%s2437_s2 + $0x8] sm:$0xff]  ;;  %vm687_vm0 = vcmask 261120   ;;  %vm807_vm1 = vcmask 1043456  }
   0xe   : > { %310 = vperm.xlu0 %1535, %v296_v0   ;;  %s2558_s18 = smov (!%p260_p4, %s1572_s18), 1  ;;  %1537 = vset.pattern.permute.xlu2 %v2445_v2 }
   0xf   : > { %439 = vperm.xlu2 %1537, %v296_v0   ;;  %s1640_s24 = sshll.u32 %s2558_s18, 5 }
  0x10   : > { %s273_s27 = scalar_lea.vmem %s2436_s1, %s1640_s24  ;;  %s267_s11 = scalar_lea.vmem %s2435_s0, %s1640_s24 }
  0x11   : > { %v1646_v3 = vld [vmem:[%s273_s27 + $0x10] sm:$0xff]  ;;  %v1652_v5 = vld [vmem:[%s273_s27 + $0x18] sm:$0xff]  ;;  %v1663_v9 = vld [vmem:[%s273_s27 + $0x8] sm:$0xff]  ;;  %s282_s7 = scalar_lea.vmem %s2440_s5, %s1640_s24 }
  0x12   : > { %390 = vperm.xlu1 %1536, %v1646_v3   ;;  %2486 = vst [vmem:[#allocation2_spill] sm:$0xff] %v1663_v9  ;;  %v1665_v10 = vld [vmem:[%s273_s27] sm:$0xff]  ;;  %v1684_v13 = vld [vmem:[%s267_s11 + $0x8] sm:$0x77]  ;;  %v1689_v16 = vld [vmem:[%s267_s11 + $0x10] sm:$0x77] }
  0x13   : > { %2487 = vst [vmem:[#allocation3_spill] sm:$0xff] %v1665_v10  ;;  %v1682_v12 = vld [vmem:[%s267_s11] sm:$0x77]  ;;  %v324_v18 = vperm.slane %v1684_v13, 0  ;;  %v325_v19 = vperm.slane %v1684_v13, 4  ;;  %v448_v23 = vperm.slane %v1684_v13, 1 }
  0x14   : > { %2488 = vst [vmem:[#allocation4_spill] sm:$0xff] %v1682_v12  ;;  %v322_v15 = vperm.slane %v1682_v12, 0  ;;  %v323_v17 = vperm.slane %v1682_v12, 4  ;;  %v446_v20 = vperm.slane %v1682_v12, 1  ;;  %v447_v21 = vperm.slane %v1682_v12, 5 }
  0x15   : > { %2489 = vst [vmem:[#allocation5_spill] sm:$0xff] %v1684_v13  ;;  %v326_v24 = vperm.slane %v1689_v16, 0  ;;  %v550_v25 = vperm.slane %v1682_v12, 2  ;;  %v551_v27 = vperm.slane %v1682_v12, 6  ;;  %v449_v28 = vperm.slane %v1684_v13, 5 }
  0x16   : > { %315 = vperm.xlu0 %1535, %v297_v4   ;;  %2490 = vst [vmem:[#allocation6_spill] sm:$0xff] %v1689_v16  ;;  %v1696_v22 = vperm.slane %v322_v15, 0  ;;  %v1701_v26 = vperm.slane %v323_v17, 0  ;;  %v1705_v29 = vld [vmem:[%s267_s11 + $0x18] sm:$0x77]  ;;  %v1707_v30 = vperm.slane %v324_v18, 0 }
  0x17   : > { %443 = vperm.xlu2 %1537, %v297_v4   ;;  %2491 = vst [vmem:[#allocation7_spill] sm:$0xff] %v1705_v29  ;;  %v552_v31 = vperm.slane %v1684_v13, 2  ;;  %v1710_v32 = vperm.slane %v325_v19, 0  ;;  %v450_v33 = vperm.slane %v1689_v16, 1  ;;  %v1713_v34 = vperm.slane %v446_v20, 1 }
  0x18   : > { %v1715_v35 = vperm.slane %v447_v21, 1  ;;  %v451_v36 = vperm.slane %v1689_v16, 5  ;;  %v452_v37 = vperm.slane %v1705_v29, 1  ;;  %v1721_v39 = vperm.slane %v448_v23, 1 }
  0x19   : > { %v553_v40 = vperm.slane %v1684_v13, 6  ;;  %v554_v41 = vperm.slane %v1689_v16, 2  ;;  %v327_v42 = vperm.slane %v1689_v16, 4  ;;  %v1726_v43 = vperm.slane %v550_v25, 2 }
  0x1a   : > { %395 = vperm.xlu1 %1536, %v1652_v5   ;;  %v1728_v44 = vperm.slane %v551_v27, 2  ;;  %v1730_v45 = vperm.slane %v449_v28, 1  ;;  %v453_v46 = vperm.slane %v1705_v29, 5  ;;  %v1733_v47 = vperm.slane %v552_v31, 2  ;;  %v1797_v31 = vld [vmem:[%s2437_s2 + $0x38] sm:$0xff] }
  0x1b   : > { %v1735_v48 = vperm.slane %v326_v24, 0  ;;  %v1737_v49 = vperm.slane %v450_v33, 1  ;;  %v328_v50 = vperm.slane %v1705_v29, 0  ;;  %v1740_v51 = vperm.slane %v451_v36, 1  ;;  %2503 = vst [vmem:[#allocation19_spill] sm:$0xff] %v1797_v31 }
  0x1c   : > { %v555_v52 = vperm.slane %v1689_v16, 6  ;;  %v1743_v53 = vperm.slane %v452_v37, 1  ;;  %v329_v54 = vperm.slane %v1705_v29, 4  ;;  %v1746_v55 = vperm.slane %v553_v40, 2 }
  0x1d   : > { %2492 = vst [vmem:[#allocation8_spill] sm:$0xff] %v1737_v49  ;;  %v1748_v56 = vperm.slane %v554_v41, 2  ;;  %v1750_v57 = vperm.slane %v327_v42, 0  ;;  %v556_v58 = vperm.slane %v1705_v29, 2  ;;  %v1757_v61 = vperm.slane %v453_v46, 1 }
  0x1e   : > { %300 = vperm.xlu0 %1535, %v294_v6   ;;  %2493 = vst [vmem:[#allocation9_spill] sm:$0xff] %v1740_v51  ;;  %v557_v62 = vperm.slane %v1705_v29, 6  ;;  %v1774_v17 = vperm.slane %v555_v52, 2  ;;  %v1780_v19 = vperm.slane %v329_v54, 0 }
  0x1f   : > { %1538 = vset.pattern.permute.xlu2 %v2441_v7  ;;  %2494 = vst [vmem:[#allocation10_spill] sm:$0xff] %v1743_v53  ;;  %v1785_v24 = vperm.slane %v556_v58, 2 }
  0x20   : > { %543 = vperm.xlu2 %1538, %v296_v0   ;;  %2495 = vst [vmem:[#allocation11_spill] sm:$0xff] %v1746_v55  ;;  %v1803_v36 = vperm.slane %v557_v62, 2 }
  0x21   : > { %2496 = vst [vmem:[#allocation12_spill] sm:$0xff] %v1748_v56 }
  0x22   : > { %305 = vperm.xlu1 %1536, %v295_v8   ;;  %2497 = vst [vmem:[#allocation13_spill] sm:$0xff] %v1757_v61 }
  0x23   : > { %2499 = vst [vmem:[#allocation15_spill] sm:$0xff] %v1774_v17 }
  0x24   : > { %2500 = vst [vmem:[#allocation16_spill] sm:$0xff] %v1780_v19 }
  0x25   : > { %2501 = vst [vmem:[#allocation17_spill] sm:$0xff] %v1785_v24 }
  0x26   : > { %1539 = vset.pattern.permute.xlu0 %v2441_v7  ;;  %2504 = vst [vmem:[#allocation20_spill] sm:$0xff] %v1803_v36 }
  0x27   : > { %547 = vperm.xlu0 %1539, %v297_v4  }
  0x28   : > { %1540 = vset.pattern.permute.xlu2 %v2443_v1 }
  0x29   : > { %385 = vperm.xlu2 %1540, %v1663_v9  }
  0x2a   : > { %380 = vperm.xlu1 %1536, %v1665_v10  }
  0x2f   : > { %535 = vperm.xlu0 %1539, %v294_v6  }
  0x31   : > { %1542 = vset.pattern.permute.xlu2 %v2445_v2 }
  0x32   : > { %435 = vperm.xlu2 %1542, %v295_v8   ;;  %1541 = vset.pattern.permute.xlu1 %v2445_v2 }
  0x33   : > { %431 = vperm.xlu1 %1541, %v294_v6  }
  0x37   : > { %1545 = vset.pattern.permute.xlu0 %v2443_v1 }
  0x3a   : > { %1544 = vset.pattern.permute.xlu2 %v2443_v1 }
  0x3b   : > { %1543 = vset.pattern.permute.xlu1 %v2441_v7 }
  0x3c   : > { %539 = vperm.xlu1 %1543, %v295_v8   ;;  %v1768_v8 = vperm.slane %v328_v50, 0 }
  0x3e   : > { %2498 = vst [vmem:[#allocation14_spill] sm:$0xff] %v1768_v8 }
  0x44   : > { %1546 = vset.pattern.permute.xlu1 %v2443_v1 }
  0x45   : > { %855 = vperm.xlu1 %1546, %v1797_v31  }
  0x69   : > { %v1676_v11 = vpop.permute.xlu2 %439 }
  0x6a   : > { %v486_v59 = vmul.f32 %v1713_v34, %v1676_v11  ;;  %v487_v60 = vmul.f32 %v1715_v35, %v1676_v11  ;;  %v488_v0 = vmul.f32 %v1721_v39, %v1676_v11  ;;  %v489_v4 = vmul.f32 %v1730_v45, %v1676_v11 }
  0x6b   : > { %v1766_v6 = vmul.f32 %v1737_v49, %v1676_v11  ;;  %v1772_v15 = vmul.f32 %v1740_v51, %v1676_v11  ;;  %v1778_v18 = vmul.f32 %v1743_v53, %v1676_v11  ;;  %v1801_v33 = vmul.f32 %v1757_v61, %v1676_v11 }
  0x71   : > { %v1686_v14 = vpop.permute.xlu2 %443 }
  0x72   : > { %v1791_v27 = vmul.f32 %v1713_v34, %v1686_v14  ;;  %v1807_v37 = vmul.f32 %v1715_v35, %v1686_v14  ;;  %v1811_v40 = vmul.f32 %v1721_v39, %v1686_v14  ;;  %v1815_v41 = vmul.f32 %v1730_v45, %v1686_v14 }
  0x73   : > { %v1820_v11 = vmul.f32 %v1737_v49, %v1686_v14  ;;  %v1826_v50 = vmul.f32 %v1740_v51, %v1686_v14  ;;  %v1830_v52 = vmul.f32 %v1743_v53, %v1686_v14  ;;  %v1834_v54 = vmul.f32 %v1757_v61, %v1686_v14 }
  0x7a   : > { %v1719_v38 = vpop.permute.xlu2 %543 }
  0x7b   : > { %v590_v46 = vmul.f32 %v1726_v43, %v1719_v38  ;;  %v591_v2 = vmul.f32 %v1728_v44, %v1719_v38  ;;  %v592_v29 = vmul.f32 %v1733_v47, %v1719_v38  ;;  %v593_v14 = vmul.f32 %v1746_v55, %v1719_v38 }
  0x80   : > { %v311_v63 = vpop.permute.xlu0 %310 }
  0x81   : > { %v362_v20 = vmul.f32 %v1696_v22, %v311_v63  ;;  %v363_v21 = vmul.f32 %v1701_v26, %v311_v63  ;;  %v364_v23 = vmul.f32 %v1707_v30, %v311_v63  ;;  %v365_v28 = vmul.f32 %v1710_v32, %v311_v63 }
  0x82   : > { %v366_v1 = vmul.f32 %v1735_v48, %v311_v63  ;;  %v367_v13 = vmul.f32 %v1750_v57, %v311_v63  ;;  %v369_v61 = vmul.f32 %v1780_v19, %v311_v63 }
  0x83   : > { %v1787_v25 = vpop.permute.xlu2 %385 }
  0x84   : > { %2502 = vst [vmem:[#allocation18_spill] sm:$0xff] %v1787_v25  ;;  %v391_v42 = vpop.permute.xlu1 %390  ;;  %v2505_v25 = vmov 1  }
  0x85   : > { %v414_v58 = vadd.f32 %v391_v42, %v362_v20  ;;  %v415_v62 = vadd.f32 %v391_v42, %v363_v21  ;;  %v416_v7 = vadd.f32 %v391_v42, %v364_v23  ;;  %v417_v16 = vadd.f32 %v391_v42, %v365_v28  ;;  %1548 = vset.pattern.permute.xlu1 %v2505_v25 }
  0x86   : > { %v594_v20 = vmul.f32 %v1748_v56, %v1719_v38  ;;  %v595_v21 = vmul.f32 %v1774_v17, %v1719_v38  ;;  %v368_v23 = vmul.f32 %v1768_v8, %v311_v63  ;;  %931 = vperm.xlu1 %1548, %v1652_v5   ;;  %v1886_v5 = vld [vmem:[%s2439_s4] sm:$0x7] }
  0x87   : > { %v518_v53 = vadd.f32 %v486_v59, %v414_v58  ;;  %v519_v9 = vadd.f32 %v487_v60, %v415_v62  ;;  %v520_v10 = vadd.f32 %v488_v0, %v416_v7  ;;  %v418_v59 = vadd.f32 %v391_v42, %v366_v1  ;;  %v1868_v1 = vld [vmem:[%s2437_s2 + $0x30] sm:$0xff]  ;;  %2508 = vst [vmem:[#allocation23_spill] sm:$0xff] %v1886_v5 }
  0x88   : > { %v316_v12 = vpop.permute.xlu0 %315  ;;  %v1854_v7 = vmul.f32 %v1785_v24, %v1719_v38  ;;  %v521_v58 = vadd.f32 %v489_v4, %v417_v16  ;;  %v419_v62 = vadd.f32 %v391_v42, %v367_v13  ;;  %2506 = vst [vmem:[#allocation21_spill] sm:$0xff] %v1868_v1  ;;  %v1872_v24 = vmul.f32 %v1803_v36, %v1719_v38 }
  0x89   : > { %v370_v28 = vmul.f32 %v1696_v22, %v316_v12  ;;  %v371_v51 = vmul.f32 %v1701_v26, %v316_v12  ;;  %v372_v60 = vmul.f32 %v1707_v30, %v316_v12  ;;  %v373_v0 = vmul.f32 %v1710_v32, %v316_v12  ;;  %850 = vperm.xlu0 %1545, %v1868_v1  }
  0x8a   : > { %v1858_v17 = vadd.f32 %v590_v46, %v518_v53  ;;  %v1860_v56 = vadd.f32 %v591_v2, %v519_v9  ;;  %v1862_v63 = vadd.f32 %v592_v29, %v520_v10  ;;  %2507 = vst [vmem:[#allocation22_spill] sm:$0xff] %v1872_v24  ;;  %v374_v2 = vmul.f32 %v1735_v48, %v316_v12 }
  0x8b   : > { %v420_v9 = vadd.f32 %v391_v42, %v368_v23  ;;  %v421_v10 = vadd.f32 %v391_v42, %v369_v61  ;;  %v522_v53 = vadd.f32 %v1766_v6, %v418_v59  ;;  %v375_v4 = vmul.f32 %v1750_v57, %v316_v12  ;;  %822 = vperm.xlu2 %1544, %v1886_v5  }
  0x8c   : > { %v396_v55 = vpop.permute.xlu1 %395  ;;  %v1874_v16 = vpop.permute.xlu2 %435  ;;  %v1881_v36 = vadd.f32 %v593_v14, %v521_v58  ;;  %v523_v1 = vadd.f32 %v1772_v15, %v419_v62  ;;  %v376_v61 = vmul.f32 %v1768_v8, %v316_v12  ;;  %v2521_v8 = vld [vmem:[#allocation17_spill] sm:$0xff] }
  0x8d   : > { %v422_v13 = vadd.f32 %v396_v55, %v370_v28  ;;  %v423_v29 = vadd.f32 %v396_v55, %v371_v51  ;;  %v424_v46 = vadd.f32 %v396_v55, %v372_v60  ;;  %v425_v38 = vadd.f32 %v396_v55, %v373_v0  ;;  %v1920_v51 = vld [vmem:[%s2437_s2 + $0x20] sm:$0xff] }
  0x8e   : > { %v1897_v42 = vmul.f32 %v1713_v34, %v1874_v16  ;;  %v1901_v14 = vmul.f32 %v1715_v35, %v1874_v16  ;;  %v1905_v15 = vmul.f32 %v1721_v39, %v1874_v16  ;;  %v1909_v23 = vmul.f32 %v1730_v45, %v1874_v16  ;;  %2511 = vst [vmem:[#allocation26_spill] sm:$0xff] %v1920_v51 }
  0x8f   : > { %v426_v28 = vadd.f32 %v396_v55, %v374_v2  ;;  %v526_v59 = vadd.f32 %v1791_v27, %v422_v13  ;;  %v527_v60 = vadd.f32 %v1807_v37, %v423_v29  ;;  %v1913_v0 = vadd.f32 %v594_v20, %v522_v53 }
  0x90   : > { %v1889_v24 = vpop.permute.xlu0 %300  ;;  %v427_v58 = vadd.f32 %v396_v55, %v375_v4  ;;  %v528_v62 = vadd.f32 %v1811_v40, %v424_v46  ;;  %v529_v6 = vadd.f32 %v1815_v41, %v425_v38  ;;  %v377_v2 = vmul.f32 %v1780_v19, %v316_v12  ;;  %v2517_v19 = vld [vmem:[#allocation18_spill] sm:$0xff] }
  0x91   : > { %2509 = vst [vmem:[#allocation24_spill] sm:$0xff] %v1889_v24  ;;  %v1926_v27 = vmul.f32 %v1696_v22, %v1889_v24  ;;  %v1930_v37 = vmul.f32 %v1701_v26, %v1889_v24  ;;  %v1934_v40 = vmul.f32 %v1707_v30, %v1889_v24  ;;  %v1936_v41 = vadd.f32 %v595_v21, %v523_v1  ;;  %v2516_v1 = vld [vmem:[#allocation11_spill] sm:$0xff] }
  0x92   : > { %2510 = vst [vmem:[#allocation25_spill] sm:$0xff] %v1913_v0  ;;  %v657_v13 = vmax.f32 %v1881_v36, 0.0  ;;  %v2513_v29 = vmov 0   ;;  %1549 = vset.pattern.permute.xlu0 %v2505_v25  ;;  %v428_v12 = vadd.f32 %v396_v55, %v376_v61  ;;  %v524_v53 = vadd.f32 %v1778_v18, %v420_v9  ;;  %v2520_v0 = vld [vmem:[#allocation15_spill] sm:$0xff] }
  0x93   : > { %2512 = vst [vmem:[#allocation27_spill] sm:$0xff] %v1936_v41  ;;  %1550 = vset.pattern.permute.xlu1 %v2513_v29  ;;  %v429_v4 = vadd.f32 %v396_v55, %v377_v2  ;;  %v1947_v46 = vmul.f32 %v1710_v32, %v1889_v24  ;;  %v530_v21 = vadd.f32 %v1820_v11, %v426_v28 }
  0x94   : > { %v1938_v20 = vpop.permute.xlu1 %305  ;;  %840 = vperm.xlu1 %1550, %v1920_v51   ;;  %v531_v36 = vadd.f32 %v1826_v50, %v427_v58  ;;  %979 = vperm.xlu0 %1549, %v1797_v31   ;;  %v525_v18 = vadd.f32 %v1801_v33, %v421_v10  ;;  %v1964_v11 = vmul.f32 %v1735_v48, %v1889_v24 }
  0x95   : > { %v354_v38 = vmul.f32 %v1696_v22, %v1938_v20  ;;  %v355_v61 = vmul.f32 %v1701_v26, %v1938_v20  ;;  %v356_v55 = vmul.f32 %v1707_v30, %v1938_v20  ;;  %1547 = vset.pattern.permute.xlu2 %v2505_v25  ;;  %v1968_v22 = vmul.f32 %v1737_v49, %v1874_v16 }
  0x96   : > { %v1972_v26 = vmul.f32 %v1750_v57, %v1889_v24  ;;  %v357_v33 = vmul.f32 %v1710_v32, %v1938_v20  ;;  %v532_v50 = vadd.f32 %v1830_v52, %v428_v12  ;;  %v1978_v10 = vadd.f32 %v1854_v7, %v524_v53  ;;  %927 = vperm.xlu2 %1547, %v1646_v3   ;;  %v2518_v7 = vld [vmem:[#allocation22_spill] sm:$0xff] }
  0x97   : > { %2514 = vst [vmem:[#allocation28_spill] sm:$0xff] %v1968_v22  ;;  %v533_v28 = vadd.f32 %v1834_v54, %v429_v4  ;;  %v406_v51 = vadd.f32 %v2517_v19, %v354_v38  ;;  %v407_v32 = vadd.f32 %v2517_v19, %v355_v61  ;;  %v408_v52 = vadd.f32 %v2517_v19, %v356_v55  ;;  %v2519_v22 = vld [vmem:[#allocation12_spill] sm:$0xff] }
  0x98   : > { %2515 = vst [vmem:[#allocation29_spill] sm:$0xff] %v1972_v26  ;;  %v1990_v12 = vadd.f32 %v2518_v7, %v525_v18  ;;  %v2522_v38 = vld [vmem:[#allocation20_spill] sm:$0xff]  ;;  %v2523_v18 = vmov 2  }
  0x99   : > { %v548_v30 = vpop.permute.xlu0 %547 }
  0x9a   : > { %v598_v58 = vmul.f32 %v1726_v43, %v548_v30  ;;  %v599_v2 = vmul.f32 %v1728_v44, %v548_v30  ;;  %v600_v9 = vmul.f32 %v1733_v47, %v548_v30  ;;  %v601_v31 = vmul.f32 %v2516_v1, %v548_v30 }
  0x9b   : > { %v602_v41 = vmul.f32 %v2519_v22, %v548_v30  ;;  %v603_v29 = vmul.f32 %v2520_v0, %v548_v30  ;;  %v604_v24 = vmul.f32 %v2521_v8, %v548_v30  ;;  %v605_v26 = vmul.f32 %v2522_v38, %v548_v30 }
  0x9c   : > { %v630_v54 = vadd.f32 %v598_v58, %v526_v59  ;;  %v631_v53 = vadd.f32 %v599_v2, %v527_v60  ;;  %v632_v3 = vadd.f32 %v600_v9, %v528_v62  ;;  %v633_v4 = vadd.f32 %v601_v31, %v529_v6  ;;  %v1992_v5 = vpop.permute.xlu1 %380  ;;  %1552 = vset.pattern.permute.xlu1 %v2523_v18  ;;  %v2524_v60 = vld [vmem:[#allocation9_spill] sm:$0xff] }
  0x9d   : > { %v409_v59 = vadd.f32 %v2517_v19, %v357_v33  ;;  %v358_v31 = vmul.f32 %v1735_v48, %v1938_v20  ;;  %v359_v6 = vmul.f32 %v1750_v57, %v1938_v20  ;;  %v2006_v62 = vmul.f32 %v2524_v60, %v1874_v16  ;;  %v2525_v9 = vld [vmem:[#allocation21_spill] sm:$0xff]  ;;  %v2529_v48 = vld [vmem:[#allocation3_spill] sm:$0xff] }
  0x9e   : > { %v662_v61 = vmax.f32 %v630_v54, 0.0  ;;  %v663_v49 = vmax.f32 %v631_v53, 0.0  ;;  %v664_v55 = vmax.f32 %v632_v3, 0.0  ;;  %v665_v25 = vmax.f32 %v633_v4, 0.0  ;;  %1079 = vperm.xlu1 %1552, %v2525_v9   ;;  %919 = vperm.xlu0 %1549, %v2529_v48  }
  0x9f   : > { %v2526_v30 = vmax.f32 %v1858_v17, 0.0  ;;  %v2527_v2 = vmax.f32 %v1860_v56, 0.0  ;;  %v2528_v33 = vmax.f32 %v1862_v63, 0.0  ;;  %v2019_v57 = vadd.f32 %v1897_v42, %v406_v51  ;;  %975 = vperm.xlu2 %1547, %v2525_v9  }
  0xa0   : > { %v682_v53 = vpack.c.bf16 %v665_v25, %v657_v13  ;;  %v2022_v4 = vadd.f32 %v1901_v14, %v407_v32  ;;  %v634_v38 = vadd.f32 %v602_v41, %v530_v21  ;;  %v635_v17 = vadd.f32 %v603_v29, %v531_v36 }
  0xa1   : > { %v679_v58 = vpack.c.bf16 %v662_v61, %v2526_v30  ;;  %v680_v7 = vpack.c.bf16 %v663_v49, %v2527_v2  ;;  %v681_v54 = vpack.c.bf16 %v664_v55, %v2528_v33  ;;  %v2016_v3 = vpop.permute.xlu0 %535  ;;  %v2026_v49 = vadd.f32 %v1905_v15, %v408_v52  ;;  %v2531_v55 = vld [vmem:[#allocation8_spill] sm:$0xff] }
  0xa2   : > { %v2028_v56 = vadd.f32 %v604_v24, %v532_v50  ;;  %v660_v25 = vmax.f32 %v1978_v10, 0.0  ;;  %v2031_v63 = vadd.f32 %v605_v26, %v533_v28  ;;  %736 = vmatpush.bf16.msra.mxu3 %v682_v53  ;;  %v398_v51 = vadd.f32 %v1992_v5, %v1926_v27  ;;  %v2535_v53 = vld [vmem:[#allocation14_spill] sm:$0xff] }
  0xa3   : > { %697 = vmatpush.bf16.msra.mxu0 %v679_v58  ;;  %710 = vmatpush.bf16.msra.mxu1 %v680_v7  ;;  %v399_v42 = vadd.f32 %v1992_v5, %v1930_v37  ;;  %v2038_v14 = vadd.f32 %v1909_v23, %v409_v59  ;;  %v661_v15 = vmax.f32 %v1990_v12, 0.0  ;;  %v574_v24 = vmul.f32 %v1726_v43, %v2016_v3  ;;  %v2533_v7 = vld [vmem:[#allocation29_spill] sm:$0xff] }
  0xa4   : > { %723 = vmatpush.bf16.msra.mxu2 %v681_v54  ;;  %v575_v41 = vmul.f32 %v1728_v44, %v2016_v3  ;;  %v400_v13 = vadd.f32 %v1992_v5, %v1934_v40  ;;  %v401_v27 = vadd.f32 %v1992_v5, %v1947_v46  ;;  %v576_v37 = vmul.f32 %v1733_v47, %v2016_v3  ;;  %v2063_v46 = vld [vmem:[%s2437_s2 + $0x28] sm:$0xff]  ;;  %v2534_v54 = vld [vmem:[#allocation24_spill] sm:$0xff] }
  0xa5   : > { %v577_v23 = vmul.f32 %v2516_v1, %v2016_v3  ;;  %v666_v29 = vmax.f32 %v634_v38, 0.0  ;;  %v667_v21 = vmax.f32 %v635_v17, 0.0  ;;  %v2053_v36 = vpop.permute.xlu1 %431  ;;  %v668_v26 = vmax.f32 %v2028_v56, 0.0 }
  0xa6   : > { %v669_v50 = vmax.f32 %v2031_v63, 0.0  ;;  %v402_v40 = vadd.f32 %v1992_v5, %v1964_v11  ;;  %v410_v28 = vadd.f32 %v2517_v19, %v358_v31  ;;  %v470_v32 = vmul.f32 %v1713_v34, %v2053_v36  ;;  %971 = vperm.xlu0 %1549, %v2063_v46  }
  0xa7   : > { %v471_v52 = vmul.f32 %v1715_v35, %v2053_v36  ;;  %v472_v38 = vmul.f32 %v1721_v39, %v2053_v36  ;;  %v473_v61 = vmul.f32 %v1730_v45, %v2053_v36  ;;  %v2530_v11 = vmov 1   ;;  %v2532_v35 = vld [vmem:[#allocation2_spill] sm:$0xff] }
  0xa8   : > { %1554 = vset.pattern.permute.xlu1 %v2530_v11  ;;  %v474_v59 = vmul.f32 %v2531_v55, %v2053_v36  ;;  %v578_v31 = vmul.f32 %v2519_v22, %v2016_v3  ;;  %v411_v9 = vadd.f32 %v2517_v19, %v359_v6  ;;  %v475_v34 = vmul.f32 %v2524_v60, %v2053_v36 }
  0xa9   : > { %923 = vperm.xlu1 %1554, %v2532_v35   ;;  %v502_v30 = vadd.f32 %v470_v32, %v398_v51  ;;  %v503_v39 = vadd.f32 %v471_v52, %v399_v42  ;;  %v504_v58 = vadd.f32 %v472_v38, %v400_v13  ;;  %v505_v2 = vadd.f32 %v473_v61, %v401_v27  ;;  %v2537_v13 = vld [vmem:[#allocation25_spill] sm:$0xff]  ;;  %v2539_v32 = vld [vmem:[#allocation27_spill] sm:$0xff]  ;;  %v2541_v61 = vld [vmem:[#allocation28_spill] sm:$0xff] }
  0xaa   : > { %v506_v45 = vadd.f32 %v474_v59, %v402_v40  ;;  %v403_v33 = vadd.f32 %v1992_v5, %v2533_v7  ;;  %v352_v48 = vmul.f32 %v2535_v53, %v2534_v54  ;;  %v360_v6 = vmul.f32 %v2535_v53, %v1938_v20  ;;  %v2542_v35 = vld [vmem:[#allocation10_spill] sm:$0xff] }
  0xab   : > { %v2536_v17 = vmov 0   ;;  %v606_v60 = vadd.f32 %v574_v24, %v502_v30  ;;  %v607_v55 = vadd.f32 %v575_v41, %v503_v39  ;;  %v608_v51 = vadd.f32 %v576_v37, %v504_v58 }
  0xac   : > { %1551 = vset.pattern.permute.xlu2 %v2536_v17  ;;  %v609_v42 = vadd.f32 %v577_v23, %v505_v2  ;;  %v2538_v27 = vmax.f32 %v2537_v13, 0.0  ;;  %v2540_v52 = vmax.f32 %v2539_v32, 0.0  ;;  %v514_v59 = vadd.f32 %v2541_v61, %v410_v28  ;;  %v2547_v61 = vld [vmem:[#allocation13_spill] sm:$0xff] }
  0xad   : > { %845 = vperm.xlu2 %1551, %v2063_v46   ;;  %v476_v7 = vmul.f32 %v2542_v35, %v2053_v36  ;;  %v507_v53 = vadd.f32 %v475_v34, %v403_v33  ;;  %v515_v24 = vadd.f32 %v2006_v62, %v411_v9  ;;  %v579_v41 = vmul.f32 %v2520_v0, %v2016_v3 }
  0xae   : > { %v2093_v40 = vpack.c.bf16 %v666_v29, %v2538_v27  ;;  %v2097_v38 = vpack.c.bf16 %v667_v21, %v2540_v52  ;;  %v404_v37 = vadd.f32 %v1992_v5, %v352_v48  ;;  %v638_v23 = vmax.f32 %v606_v60, 0.0  ;;  %v540_v39 = vpop.permute.xlu1 %539  ;;  %v2543_v60 = vld [vmem:[#allocation23_spill] sm:$0xff] }
  0xaf   : > { %v639_v29 = vmax.f32 %v607_v55, 0.0  ;;  %v2106_v30 = vadd.f32 %v578_v31, %v506_v45  ;;  %v412_v21 = vadd.f32 %v2517_v19, %v360_v6  ;;  %v640_v58 = vmax.f32 %v608_v51, 0.0  ;;  %1356 = vperm.xlu0 %1549, %v2543_v60   ;;  %v2544_v55 = vld [vmem:[#allocation26_spill] sm:$0xff]  ;;  %v2546_v52 = vld [vmem:[#allocation19_spill] sm:$0xff] }
  0xb0   : > { %v641_v28 = vmax.f32 %v609_v42, 0.0  ;;  %v484_v2 = vmul.f32 %v2542_v35, %v1874_v16  ;;  %v508_v34 = vadd.f32 %v476_v7, %v404_v37  ;;  %v582_v62 = vmul.f32 %v1726_v43, %v540_v39  ;;  %v2545_v42 = vld [vmem:[#allocation16_spill] sm:$0xff] }
  0xb1   : > { %v583_v9 = vmul.f32 %v1728_v44, %v540_v39  ;;  %v584_v33 = vmul.f32 %v1733_v47, %v540_v39  ;;  %v585_v48 = vmul.f32 %v2516_v1, %v540_v39  ;;  %1556 = vset.pattern.permute.xlu1 %v2523_v18  ;;  %v586_v31 = vmul.f32 %v2519_v22, %v540_v39 }
  0xb2   : > { %v587_v45 = vmul.f32 %v2520_v0, %v540_v39  ;;  %v580_v6 = vmul.f32 %v2521_v8, %v2016_v3  ;;  %v588_v17 = vmul.f32 %v2521_v8, %v540_v39  ;;  %v614_v43 = vadd.f32 %v582_v62, %v2019_v57  ;;  %1071 = vperm.xlu1 %1556, %v2544_v55  }
  0xb3   : > { %v615_v44 = vadd.f32 %v583_v9, %v2022_v4  ;;  %v616_v47 = vadd.f32 %v584_v33, %v2026_v49  ;;  %v617_v1 = vadd.f32 %v585_v48, %v2038_v14  ;;  %v618_v22 = vadd.f32 %v586_v31, %v514_v59 }
  0xb4   : > { %v619_v51 = vadd.f32 %v587_v45, %v515_v24  ;;  %v516_v0 = vadd.f32 %v484_v2, %v412_v21  ;;  %v361_v13 = vmul.f32 %v2545_v42, %v1938_v20  ;;  %v646_v8 = vmax.f32 %v614_v43, 0.0 }
  0xb5   : > { %1553 = vset.pattern.permute.xlu2 %v2523_v18  ;;  %v647_v27 = vmax.f32 %v615_v44, 0.0  ;;  %v648_v32 = vmax.f32 %v616_v47, 0.0  ;;  %v649_v57 = vmax.f32 %v617_v1, 0.0  ;;  %v611_v4 = vadd.f32 %v579_v41, %v507_v53 }
  0xb6   : > { %1083 = vperm.xlu2 %1553, %v2546_v52   ;;  %v620_v49 = vadd.f32 %v588_v17, %v516_v0  ;;  %v353_v14 = vmul.f32 %v2545_v42, %v2534_v54  ;;  %v477_v59 = vmul.f32 %v2547_v61, %v2053_v36  ;;  %v671_v35 = vpack.c.bf16 %v646_v8, %v638_v23  ;;  %v2548_v23 = vld [vmem:[#allocation20_spill] sm:$0xff] }
  0xb7   : > { %v672_v7 = vpack.c.bf16 %v647_v27, %v639_v29  ;;  %v673_v24 = vpack.c.bf16 %v648_v32, %v640_v58  ;;  %v674_v20 = vpack.c.bf16 %v649_v57, %v641_v28  ;;  %v685_v37 = vpack.c.bf16 %v668_v26, %v660_v25 }
  0xb8   : > { %v650_v21 = vmax.f32 %v618_v22, 0.0  ;;  %v612_v2 = vadd.f32 %v580_v6, %v508_v34  ;;  %v405_v53 = vadd.f32 %v1992_v5, %v353_v14  ;;  %698 = vmatpush.bf16.msra.mxu0 %v671_v35  ;;  %v651_v41 = vmax.f32 %v619_v51, 0.0  ;;  %v670_v5 = vld [vmem:[%s2438_s3] sm:$0x3]  ;;  %v2168_v34 = vpop.permute.xlu1 %855  ;;  %v2549_v22 = vld [vmem:[#allocation4_spill] sm:$0xff] }
  0xb9   : > { %711 = vmatpush.bf16.msra.mxu1 %v672_v7  ;;  %v413_v54 = vadd.f32 %v2517_v19, %v361_v13  ;;  %v485_v36 = vmul.f32 %v2547_v61, %v1874_v16  ;;  %v581_v29 = vmul.f32 %v2548_v23, %v2016_v3  ;;  %724 = vmatpush.bf16.msra.mxu2 %v673_v24  ;;  %v652_v56 = vmax.f32 %v620_v49, 0.0 }
  0xba   : > { %737 = vmatpush.bf16.msra.mxu3 %v674_v20  ;;  %v686_v10 = vpack.c.bf16 %v669_v50, %v661_v15  ;;  %v509_v25 = vadd.f32 %v477_v59, %v405_v53  ;;  %v589_v19 = vmul.f32 %v2548_v23, %v540_v39  ;;  %v642_v16 = vmax.f32 %v2106_v30, 0.0 }
  0xbb   : > { %v643_v3 = vmax.f32 %v611_v4, 0.0  ;;  %v517_v26 = vadd.f32 %v485_v36, %v413_v54  ;;  %v644_v12 = vmax.f32 %v612_v2, 0.0  ;;  %1481 = vmatmul.msk.bf16.vlgmr.msra.gmra.mxu0 %vm687_vm0, %v670_v5  ;;  %v1585_v48 = vmov 839922192   ;;  %v2550_v2 = vld [vmem:[#allocation5_spill] sm:$0xff] }
  0xbc   : > { %749 = vmatpush.bf16.msrb.mxu0 %v2093_v40  ;;  %v613_v63 = vadd.f32 %v581_v29, %v509_v25  ;;  %1482 = vmatmul.msk.bf16.vlgmr.msra.gmra.mxu1 %vm687_vm0, %v670_v5  ;;  %v675_v15 = vpack.c.bf16 %v650_v21, %v642_v16  ;;  %v2182_v31 = vunpack.c.l.s4 %v1585_v48 }
  0xbd   : > { %762 = vmatpush.bf16.msrb.mxu1 %v2097_v38  ;;  %775 = vmatpush.bf16.msrb.mxu2 %v685_v37  ;;  %v676_v50 = vpack.c.bf16 %v651_v41, %v643_v3  ;;  %v621_v58 = vadd.f32 %v589_v19, %v517_v26  ;;  %v677_v40 = vpack.c.bf16 %v652_v56, %v644_v12 }
  0xbe   : > { %788 = vmatpush.bf16.msrb.mxu3 %v686_v10  ;;  %1483 = vmatmul.msk.bf16.vlgmr.msra.gmra.mxu2 %vm687_vm0, %v670_v5  ;;  %v645_v38 = vmax.f32 %v613_v63, 0.0  ;;  %v826_v60 = vunpack.c.0.s8 %v2182_v31 }
  0xbf   : > { %1484 = vmatmul.msk.bf16.vlgmr.msra.gmra.mxu3 %vm687_vm0, %v670_v5  ;;  %v653_v30 = vmax.f32 %v621_v58, 0.0  ;;  %1555 = vset.pattern.permute.xlu2 %v2530_v11 }
  0xc0   : > { %750 = vmatpush.bf16.msrb.mxu0 %v675_v15  ;;  %967 = vperm.xlu2 %1555, %v2544_v55  }
  0xc1   : > { %763 = vmatpush.bf16.msrb.mxu1 %v676_v50  ;;  %776 = vmatpush.bf16.msrb.mxu2 %v677_v40  ;;  %v678_v39 = vpack.c.bf16 %v653_v30, %v645_v38 }
  0xc3   : > { %789 = vmatpush.bf16.msrb.mxu3 %v678_v39 }
  0xc8   : > { %1557 = vset.pattern.permute.xlu2 %v2523_v18 }
  0xc9   : > { %1075 = vperm.xlu2 %1557, %v2063_v46  }
  0xcb   : > { %1485 = vmatmul.msk.bf16.vlgmr.msrb.gmra.mxu0 %vm687_vm0, %v670_v5 }
  0xcc   : > { %1486 = vmatmul.msk.bf16.vlgmr.msrb.gmra.mxu1 %vm687_vm0, %v670_v5 }
  0xce   : > { %1487 = vmatmul.msk.bf16.vlgmr.msrb.gmra.mxu2 %vm687_vm0, %v670_v5 }
  0xcf   : > { %1488 = vmatmul.msk.bf16.vlgmr.msrb.gmra.mxu3 %vm687_vm0, %v670_v5 }
  0xe5   : > { %v823_v28 = vpop.permute.xlu2 %822 }
  0xe6   : > { %v2194_v55 = vperm.slane %v823_v28, %v826_v60 }
  0xf0   : > { %v2170_v11 = vpop.permute.xlu2 %927 }
  0xf8   : > { %v2172_v62 = vpop.permute.xlu1 %931 }
  0xf9   : > { %v2174_v9 = vpop.permute.xlu2 %975 }
  0xfb   : > { %v2176_v18 = vpop.permute.xlu0 %850 }
 0x106   : > { %v2178_v46 = vpop.permute.xlu1 %840  ;;  %v2184_v45 = vpop.permute.xlu0 %979 }
 0x107   : > { %v2180_v33 = vpop.permute.xlu2 %845 }
 0x110   : > { %v2186_v6 = vpop.permute.xlu1 %1079  ;;  %v2188_v17 = vpop.permute.xlu2 %1083 }
 0x111   : > { %v2200_v13 = vpop.permute.xlu0 %919 }
 0x11a   : > { %v2207_v14 = vpop.permute.xlu2 %967 }
 0x11b   : > { %v2202_v27 = vpop.permute.xlu1 %923 }
 0x138   : > { %v700_v47 = vpop.f32.mrf.mxu0 }
 0x139   : > { %v713_v43 = vpop.f32.mrf.mxu1 }
 0x13a   : > { %v803_v44 = vrot.slane %v713_v43, 4 }
 0x13c   : > { %v808_v1 = vsel %vm807_vm1, %v700_v47, %v803_v44 }
 0x13d   : > { %v816_v51 = vadd.f32 %v808_v1, %v2549_v22 }
 0x13f   : > { %v2198_v0 = vadd.f32 %v2194_v55, %v816_v51 }
 0x140   : > { %v702_v61 = vpop.f32.mrf.mxu0 }
 0x141   : > { %v726_v42 = vpop.f32.mrf.mxu2  ;;  %v715_v57 = vpop.f32.mrf.mxu1  ;;  %v862_v52 = vperm.slane %v2198_v0, 0  ;;  %v982_v4 = vperm.slane %v2198_v0, 1  ;;  %v1086_v49 = vperm.slane %v2198_v0, 2  ;;  %v863_v59 = vperm.slane %v2198_v0, 4 }
 0x142   : > { %v739_v8 = vpop.f32.mrf.mxu3  ;;  %v983_v35 = vperm.slane %v2198_v0, 5  ;;  %v1087_v7 = vperm.slane %v2198_v0, 6  ;;  %v2249_v61 = vpop.permute.xlu2 %1075 }
 0x143   : > { %v804_v32 = vrot.slane %v739_v8, 4  ;;  %v878_v20 = vperm.slane %v862_v52, 0  ;;  %v998_v37 = vperm.slane %v982_v4, 1  ;;  %v1102_v21 = vperm.slane %v1086_v49, 2  ;;  %v2244_v8 = vpop.permute.xlu0 %971 }
 0x144   : > { %v879_v41 = vperm.slane %v863_v59, 0  ;;  %v2214_v54 = vperm.slane %v983_v35, 1  ;;  %v2216_v36 = vperm.slane %v1087_v7, 2 }
 0x145   : > { %v809_v24 = vsel %vm807_vm1, %v726_v42, %v804_v32  ;;  %v902_v23 = vmul.f32 %v878_v20, %v2176_v18  ;;  %v910_v29 = vmul.f32 %v878_v20, %v2168_v34  ;;  %v1022_v10 = vmul.f32 %v998_v37, %v2174_v9  ;;  %v2246_v32 = vpop.permute.xlu1 %1071 }
 0x146   : > { %v817_v53 = vadd.f32 %v809_v24, %v2550_v2  ;;  %v1030_v5 = vmul.f32 %v998_v37, %v2184_v45  ;;  %v1126_v25 = vmul.f32 %v1102_v21, %v2186_v6  ;;  %v1134_v19 = vmul.f32 %v1102_v21, %v2188_v17 }
 0x147   : > { %v903_v16 = vmul.f32 %v879_v41, %v2176_v18  ;;  %v950_v26 = vadd.f32 %v2170_v11, %v902_v23  ;;  %v958_v12 = vadd.f32 %v2172_v62, %v910_v29  ;;  %v911_v63 = vmul.f32 %v879_v41, %v2168_v34 }
 0x148   : > { %v2223_v56 = vadd.f32 %v2194_v55, %v817_v53  ;;  %v1023_v15 = vmul.f32 %v2214_v54, %v2174_v9  ;;  %v1031_v40 = vmul.f32 %v2214_v54, %v2184_v45  ;;  %v1127_v38 = vmul.f32 %v2216_v36, %v2186_v6  ;;  %v752_v1 = vpop.f32.mrf.mxu0 }
 0x149   : > { %v728_v3 = vpop.f32.mrf.mxu2  ;;  %v951_v58 = vadd.f32 %v2170_v11, %v903_v16  ;;  %v1135_v30 = vmul.f32 %v2216_v36, %v2188_v17  ;;  %v765_v39 = vpop.f32.mrf.mxu1  ;;  %v1054_v28 = vadd.f32 %v1022_v10, %v950_v26  ;;  %v1062_v48 = vadd.f32 %v1030_v5, %v958_v12 }
 0x14a   : > { %v741_v50 = vpop.f32.mrf.mxu3  ;;  %v959_v43 = vadd.f32 %v2172_v62, %v911_v63  ;;  %v886_v44 = vmul.f32 %v878_v20, %v2178_v46  ;;  %v805_v47 = vrot.slane %v765_v39, 4  ;;  %v894_v51 = vmul.f32 %v878_v20, %v2180_v33  ;;  %v2551_v20 = vld [vmem:[#allocation6_spill] sm:$0xff] }
 0x14b   : > { %v1055_v22 = vadd.f32 %v1023_v15, %v951_v58  ;;  %v1006_v42 = vmul.f32 %v998_v37, %v2207_v14  ;;  %v1158_v57 = vadd.f32 %v1126_v25, %v1054_v28  ;;  %v1166_v52 = vadd.f32 %v1134_v19, %v1062_v48 }
 0x14c   : > { %v1063_v4 = vadd.f32 %v1031_v40, %v959_v43  ;;  %v934_v49 = vadd.f32 %v2200_v13, %v886_v44  ;;  %v810_v59 = vsel %vm807_vm1, %v752_v1, %v805_v47  ;;  %v942_v7 = vadd.f32 %v2202_v27, %v894_v51 }
 0x14d   : > { %v1159_v35 = vadd.f32 %v1127_v38, %v1055_v22  ;;  %v1014_v24 = vmul.f32 %v998_v37, %v2244_v8  ;;  %v818_v2 = vadd.f32 %v810_v59, %v2551_v20  ;;  %v1190_v53 = vmax.f32 %v1158_v57, 0.0  ;;  %v2552_v57 = vld [vmem:[#allocation7_spill] sm:$0xff] }
 0x14e   : > { %v1198_v23 = vmax.f32 %v1166_v52, 0.0  ;;  %v1167_v29 = vadd.f32 %v1135_v30, %v1063_v4  ;;  %v1038_v5 = vadd.f32 %v1006_v42, %v934_v49  ;;  %v1110_v19 = vmul.f32 %v1102_v21, %v2246_v32 }
 0x14f   : > { %v1191_v10 = vmax.f32 %v1159_v35, 0.0  ;;  %v1046_v25 = vadd.f32 %v1014_v24, %v942_v7  ;;  %v2257_v16 = vadd.f32 %v2194_v55, %v818_v2  ;;  %v1118_v63 = vmul.f32 %v1102_v21, %v2249_v61 }
 0x150   : > { %v1216_v26 = vpack.c.bf16 %v1198_v23, %v1190_v53  ;;  %v1199_v12 = vmax.f32 %v1167_v29, 0.0  ;;  %v1142_v37 = vadd.f32 %v1110_v19, %v1038_v5  ;;  %v887_v50 = vmul.f32 %v879_v41, %v2178_v46 }
 0x151   : > { %v778_v3 = vpop.f32.mrf.mxu2  ;;  %v895_v58 = vmul.f32 %v879_v41, %v2180_v33  ;;  %v1007_v40 = vmul.f32 %v2214_v54, %v2207_v14  ;;  %v767_v39 = vpop.f32.mrf.mxu1  ;;  %v1150_v28 = vadd.f32 %v1118_v63, %v1046_v25  ;;  %v1015_v48 = vmul.f32 %v2214_v54, %v2244_v8 }
 0x152   : > { %v791_v15 = vpop.f32.mrf.mxu3  ;;  %1233 = vmatpush.bf16.msra.mxu0 %v1216_v26  ;;  %v1217_v30 = vpack.c.bf16 %v1199_v12, %v1191_v10  ;;  %v1174_v43 = vmax.f32 %v1142_v37, 0.0  ;;  %v935_v21 = vadd.f32 %v2200_v13, %v887_v50  ;;  %v1111_v47 = vmul.f32 %v2216_v36, %v2246_v32  ;;  %v754_v41 = vpop.f32.mrf.mxu0 }
 0x153   : > { %v806_v38 = vrot.slane %v791_v15, 4  ;;  %v943_v44 = vadd.f32 %v2202_v27, %v895_v58  ;;  %v1182_v22 = vmax.f32 %v1150_v28, 0.0  ;;  %v1119_v51 = vmul.f32 %v2216_v36, %v2249_v61  ;;  %v2292_v58 = vld [vmem:[%s2438_s3 + $0x2] sm:$0x3] }
 0x154   : > { %1246 = vmatpush.bf16.msra.mxu1 %v1217_v30  ;;  %v864_v42 = vperm.slane %v2223_v56, 0  ;;  %v1039_v52 = vadd.f32 %v1007_v40, %v935_v21  ;;  %v984_v49 = vperm.slane %v2223_v56, 1  ;;  %v1088_v7 = vperm.slane %v2223_v56, 2 }
 0x155   : > { %v811_v1 = vsel %vm807_vm1, %v778_v3, %v806_v38  ;;  %v1047_v4 = vadd.f32 %v1015_v48, %v943_v44  ;;  %v1208_v59 = vpack.c.bf16 %v1182_v22, %v1174_v43  ;;  %v865_v24 = vperm.slane %v2223_v56, 4 }
 0x156   : > { %v819_v54 = vadd.f32 %v811_v1, %v2552_v57  ;;  %v880_v35 = vperm.slane %v864_v42, 0  ;;  %v1143_v2 = vadd.f32 %v1111_v47, %v1039_v52  ;;  %v1000_v36 = vperm.slane %v984_v49, 1 }
 0x157   : > { %v1151_v53 = vadd.f32 %v1119_v51, %v1047_v4  ;;  %1234 = vmatpush.bf16.msra.mxu0 %v1208_v59  ;;  %v1104_v5 = vperm.slane %v1088_v7, 2  ;;  %v881_v25 = vperm.slane %v865_v24, 0  ;;  %v985_v39 = vperm.slane %v2223_v56, 5 }
 0x158   : > { %v2279_v20 = vadd.f32 %v2194_v55, %v819_v54  ;;  %v904_v29 = vmul.f32 %v880_v35, %v2176_v18  ;;  %v912_v10 = vmul.f32 %v880_v35, %v2168_v34  ;;  %v1175_v19 = vmax.f32 %v1143_v2, 0.0 }
 0x159   : > { %v780_v23 = vpop.f32.mrf.mxu2  ;;  %v1183_v3 = vmax.f32 %v1151_v53, 0.0  ;;  %v1024_v12 = vmul.f32 %v1000_v36, %v2174_v9  ;;  %v1032_v63 = vmul.f32 %v1000_v36, %v2184_v45  ;;  %v1128_v37 = vmul.f32 %v1104_v5, %v2186_v6 }
 0x15a   : > { %v793_v26 = vpop.f32.mrf.mxu3  ;;  %v952_v55 = vadd.f32 %v2170_v11, %v904_v29  ;;  %v960_v15 = vadd.f32 %v2172_v62, %v912_v10  ;;  %v1136_v50 = vmul.f32 %v1104_v5, %v2188_v17  ;;  %v905_v38 = vmul.f32 %v881_v25, %v2176_v18  ;;  %1494 = vmatmul.msk.bf16.vlgmr.msra.gmra.mxu0 %vm687_vm0, %v2292_v58 }
 0x15b   : > { %v1209_v40 = vpack.c.bf16 %v1183_v3, %v1175_v19  ;;  %v913_v30 = vmul.f32 %v881_v25, %v2168_v34  ;;  %v1089_v43 = vperm.slane %v2223_v56, 6  ;;  %v888_v21 = vmul.f32 %v880_v35, %v2178_v46 }
 0x15c   : > { %v1056_v28 = vadd.f32 %v1024_v12, %v952_v55  ;;  %v1064_v48 = vadd.f32 %v1032_v63, %v960_v15  ;;  %v953_v44 = vadd.f32 %v2170_v11, %v905_v38  ;;  %v1001_v41 = vperm.slane %v985_v39, 1 }
 0x15d   : > { %1247 = vmatpush.bf16.msra.mxu1 %v1209_v40  ;;  %v961_v47 = vadd.f32 %v2172_v62, %v913_v30  ;;  %v896_v1 = vmul.f32 %v880_v35, %v2180_v33  ;;  %v1105_v42 = vperm.slane %v1089_v43, 2  ;;  %v936_v57 = vadd.f32 %v2200_v13, %v888_v21 }
 0x15e   : > { %v1160_v22 = vadd.f32 %v1128_v37, %v1056_v28  ;;  %v1168_v51 = vadd.f32 %v1136_v50, %v1064_v48  ;;  %v1025_v54 = vmul.f32 %v1001_v41, %v2174_v9  ;;  %v1033_v52 = vmul.f32 %v1001_v41, %v2184_v45 }
 0x15f   : > { %v944_v4 = vadd.f32 %v2202_v27, %v896_v1  ;;  %v1008_v49 = vmul.f32 %v1000_v36, %v2207_v14  ;;  %v1129_v24 = vmul.f32 %v1105_v42, %v2186_v6  ;;  %v1137_v2 = vmul.f32 %v1105_v42, %v2188_v17 }
 0x160   : > { %v1192_v59 = vmax.f32 %v1160_v22, 0.0  ;;  %v1200_v7 = vmax.f32 %v1168_v51, 0.0  ;;  %1495 = vmatmul.msk.bf16.vlgmr.msra.gmra.mxu1 %vm687_vm0, %v2292_v58  ;;  %v1057_v35 = vadd.f32 %v1025_v54, %v953_v44  ;;  %v1065_v53 = vadd.f32 %v1033_v52, %v961_v47 }
 0x161   : > { %v1016_v23 = vmul.f32 %v1000_v36, %v2244_v8  ;;  %v1040_v29 = vadd.f32 %v1008_v49, %v936_v57  ;;  %v1112_v19 = vmul.f32 %v1104_v5, %v2246_v32  ;;  %v1120_v3 = vmul.f32 %v1104_v5, %v2249_v61 }
 0x162   : > { %v1218_v10 = vpack.c.bf16 %v1200_v7, %v1192_v59  ;;  %v889_v26 = vmul.f32 %v881_v25, %v2178_v46  ;;  %v1161_v12 = vadd.f32 %v1129_v24, %v1057_v35  ;;  %v1169_v63 = vadd.f32 %v1137_v2, %v1065_v53 }
 0x163   : > { %v1048_v55 = vadd.f32 %v1016_v23, %v944_v4  ;;  %v897_v15 = vmul.f32 %v881_v25, %v2180_v33  ;;  %v1144_v37 = vadd.f32 %v1112_v19, %v1040_v29  ;;  %v1009_v40 = vmul.f32 %v1001_v41, %v2207_v14 }
 0x164   : > { %1259 = vmatpush.bf16.msra.mxu2 %v1218_v10  ;;  %v937_v50 = vadd.f32 %v2200_v13, %v889_v26  ;;  %v1017_v36 = vmul.f32 %v1001_v41, %v2244_v8  ;;  %v1193_v38 = vmax.f32 %v1161_v12, 0.0  ;;  %v1201_v30 = vmax.f32 %v1169_v63, 0.0 }
 0x165   : > { %v1152_v39 = vadd.f32 %v1120_v3, %v1048_v55  ;;  %v945_v5 = vadd.f32 %v2202_v27, %v897_v15  ;;  %v1176_v28 = vmax.f32 %v1144_v37, 0.0  ;;  %v1113_v43 = vmul.f32 %v1105_v42, %v2246_v32 }
 0x166   : > { %v1041_v48 = vadd.f32 %v1009_v40, %v937_v50  ;;  %v1121_v21 = vmul.f32 %v1105_v42, %v2249_v61  ;;  %v1219_v25 = vpack.c.bf16 %v1201_v30, %v1193_v38  ;;  %v866_v1 = vperm.slane %v2257_v16, 0 }
 0x167   : > { %v1184_v44 = vmax.f32 %v1152_v39, 0.0  ;;  %v1049_v47 = vadd.f32 %v1017_v36, %v945_v5  ;;  %v986_v51 = vperm.slane %v2257_v16, 1  ;;  %v1090_v41 = vperm.slane %v2257_v16, 2 }
 0x168   : > { %v1145_v22 = vadd.f32 %v1113_v43, %v1041_v48  ;;  %v867_v57 = vperm.slane %v2257_v16, 4  ;;  %1272 = vmatpush.bf16.msra.mxu3 %v1219_v25  ;;  %v882_v4 = vperm.slane %v866_v1, 0  ;;  %v987_v49 = vperm.slane %v2257_v16, 5 }
 0x169   : > { %v1210_v54 = vpack.c.bf16 %v1184_v44, %v1176_v28  ;;  %v1153_v52 = vadd.f32 %v1121_v21, %v1049_v47  ;;  %v1002_v42 = vperm.slane %v986_v51, 1  ;;  %v1106_v7 = vperm.slane %v1090_v41, 2 }
 0x16a   : > { %v1177_v59 = vmax.f32 %v1145_v22, 0.0  ;;  %v883_v24 = vperm.slane %v867_v57, 0  ;;  %v906_v35 = vmul.f32 %v882_v4, %v2176_v18  ;;  %v914_v53 = vmul.f32 %v882_v4, %v2168_v34 }
 0x16b   : > { %1260 = vmatpush.bf16.msra.mxu2 %v1210_v54  ;;  %v1185_v2 = vmax.f32 %v1153_v52, 0.0  ;;  %v1003_v23 = vperm.slane %v987_v49, 1  ;;  %v1026_v29 = vmul.f32 %v1002_v42, %v2174_v9  ;;  %v1034_v10 = vmul.f32 %v1002_v42, %v2184_v45 }
 0x16c   : > { %v1130_v19 = vmul.f32 %v1106_v7, %v2186_v6  ;;  %v1138_v3 = vmul.f32 %v1106_v7, %v2188_v17  ;;  %v954_v12 = vadd.f32 %v2170_v11, %v906_v35  ;;  %v962_v63 = vadd.f32 %v2172_v62, %v914_v53 }
 0x16d   : > { %v1211_v26 = vpack.c.bf16 %v1185_v2, %v1177_v59  ;;  %v907_v55 = vmul.f32 %v883_v24, %v2176_v18  ;;  %v915_v15 = vmul.f32 %v883_v24, %v2168_v34  ;;  %v1027_v37 = vmul.f32 %v1003_v23, %v2174_v9 }
 0x16e   : > { %1496 = vmatmul.msk.bf16.vlgmr.msra.gmra.mxu2 %vm687_vm0, %v2292_v58  ;;  %v1035_v50 = vmul.f32 %v1003_v23, %v2184_v45  ;;  %v1091_v40 = vperm.slane %v2257_v16, 6  ;;  %v1058_v36 = vadd.f32 %v1026_v29, %v954_v12  ;;  %v1066_v38 = vadd.f32 %v1034_v10, %v962_v63 }
 0x16f   : > { %1273 = vmatpush.bf16.msra.mxu3 %v1211_v26  ;;  %v955_v30 = vadd.f32 %v2170_v11, %v907_v55  ;;  %v890_v39 = vmul.f32 %v882_v4, %v2178_v46  ;;  %v963_v5 = vadd.f32 %v2172_v62, %v915_v15  ;;  %v898_v48 = vmul.f32 %v882_v4, %v2180_v33 }
 0x170   : > { %v1107_v28 = vperm.slane %v1091_v40, 2  ;;  %v1010_v43 = vmul.f32 %v1002_v42, %v2207_v14  ;;  %v1162_v21 = vadd.f32 %v1130_v19, %v1058_v36  ;;  %v1170_v25 = vadd.f32 %v1138_v3, %v1066_v38 }
 0x171   : > { %v1059_v44 = vadd.f32 %v1027_v37, %v955_v30  ;;  %v938_v47 = vadd.f32 %v2200_v13, %v890_v39  ;;  %v1067_v1 = vadd.f32 %v1035_v50, %v963_v5  ;;  %v946_v41 = vadd.f32 %v2202_v27, %v898_v48 }
 0x172   : > { %1497 = vmatmul.msk.bf16.vlgmr.msra.gmra.mxu3 %vm687_vm0, %v2292_v58  ;;  %v1131_v22 = vmul.f32 %v1107_v28, %v2186_v6  ;;  %v1139_v51 = vmul.f32 %v1107_v28, %v2188_v17  ;;  %v1194_v57 = vmax.f32 %v1162_v21, 0.0  ;;  %v1202_v54 = vmax.f32 %v1170_v25, 0.0 }
 0x173   : > { %v1018_v52 = vmul.f32 %v1002_v42, %v2244_v8  ;;  %v1042_v4 = vadd.f32 %v1010_v43, %v938_v47  ;;  %v1114_v2 = vmul.f32 %v1106_v7, %v2246_v32  ;;  %v1122_v35 = vmul.f32 %v1106_v7, %v2249_v61 }
 0x174   : > { %v1163_v49 = vadd.f32 %v1131_v22, %v1059_v44  ;;  %v1171_v59 = vadd.f32 %v1139_v51, %v1067_v1  ;;  %v1220_v53 = vpack.c.bf16 %v1202_v54, %v1194_v57  ;;  %v891_v10 = vmul.f32 %v883_v24, %v2178_v46 }
 0x175   : > { %v1050_v29 = vadd.f32 %v1018_v52, %v946_v41  ;;  %v899_v19 = vmul.f32 %v883_v24, %v2180_v33  ;;  %v1146_v12 = vadd.f32 %v1114_v2, %v1042_v4  ;;  %v1011_v63 = vmul.f32 %v1003_v23, %v2207_v14 }
 0x176   : > { %v1195_v3 = vmax.f32 %v1163_v49, 0.0  ;;  %v1203_v26 = vmax.f32 %v1171_v59, 0.0  ;;  %1285 = vmatpush.bf16.msrb.mxu0 %v1220_v53  ;;  %v939_v55 = vadd.f32 %v2200_v13, %v891_v10  ;;  %v1019_v37 = vmul.f32 %v1003_v23, %v2244_v8 }
 0x177   : > { %v1154_v42 = vadd.f32 %v1122_v35, %v1050_v29  ;;  %v947_v15 = vadd.f32 %v2202_v27, %v899_v19  ;;  %v1178_v50 = vmax.f32 %v1146_v12, 0.0  ;;  %v1115_v40 = vmul.f32 %v1107_v28, %v2246_v32 }
 0x178   : > { %v1221_v7 = vpack.c.bf16 %v1203_v26, %v1195_v3  ;;  %v1123_v36 = vmul.f32 %v1107_v28, %v2249_v61  ;;  %v1043_v38 = vadd.f32 %v1011_v63, %v939_v55  ;;  %v868_v39 = vperm.slane %v2279_v20, 0 }
 0x179   : > { %v1186_v24 = vmax.f32 %v1154_v42, 0.0  ;;  %v1051_v30 = vadd.f32 %v1019_v37, %v947_v15  ;;  %v988_v5 = vperm.slane %v2279_v20, 1  ;;  %v1092_v48 = vperm.slane %v2279_v20, 2 }
 0x17a   : > { %1298 = vmatpush.bf16.msrb.mxu1 %v1221_v7  ;;  %v869_v43 = vperm.slane %v2279_v20, 4  ;;  %v989_v23 = vperm.slane %v2279_v20, 5  ;;  %v1147_v25 = vadd.f32 %v1115_v40, %v1043_v38  ;;  %v884_v47 = vperm.slane %v868_v39, 0 }
 0x17b   : > { %v1212_v21 = vpack.c.bf16 %v1186_v24, %v1178_v50  ;;  %v1155_v44 = vadd.f32 %v1123_v36, %v1051_v30  ;;  %v1004_v1 = vperm.slane %v988_v5, 1  ;;  %v1108_v28 = vperm.slane %v1092_v48, 2 }
 0x17c   : > { %v885_v22 = vperm.slane %v869_v43, 0  ;;  %v1005_v51 = vperm.slane %v989_v23, 1  ;;  %v1179_v41 = vmax.f32 %v1147_v25, 0.0  ;;  %v908_v54 = vmul.f32 %v884_v47, %v2176_v18 }
 0x17d   : > { %1286 = vmatpush.bf16.msrb.mxu0 %v1212_v21  ;;  %v1187_v57 = vmax.f32 %v1155_v44, 0.0  ;;  %v916_v52 = vmul.f32 %v884_v47, %v2168_v34  ;;  %v1028_v4 = vmul.f32 %v1004_v1, %v2174_v9  ;;  %v1036_v49 = vmul.f32 %v1004_v1, %v2184_v45 }
 0x17e   : > { %v1132_v59 = vmul.f32 %v1108_v28, %v2186_v6  ;;  %v1140_v2 = vmul.f32 %v1108_v28, %v2188_v17  ;;  %v956_v53 = vadd.f32 %v2170_v11, %v908_v54  ;;  %v909_v10 = vmul.f32 %v885_v22, %v2176_v18 }
 0x17f   : > { %v1213_v35 = vpack.c.bf16 %v1187_v57, %v1179_v41  ;;  %v964_v29 = vadd.f32 %v2172_v62, %v916_v52  ;;  %v917_v19 = vmul.f32 %v885_v22, %v2168_v34  ;;  %v1029_v3 = vmul.f32 %v1005_v51, %v2174_v9 }
 0x180   : > { %v1037_v26 = vmul.f32 %v1005_v51, %v2184_v45  ;;  %v1093_v12 = vperm.slane %v2279_v20, 6  ;;  %1498 = vmatmul.msk.bf16.vlgmr.msrb.gmra.mxu0 %vm687_vm0, %v2292_v58  ;;  %v1060_v63 = vadd.f32 %v1028_v4, %v956_v53  ;;  %v957_v55 = vadd.f32 %v2170_v11, %v909_v10 }
 0x181   : > { %1299 = vmatpush.bf16.msrb.mxu1 %v1213_v35  ;;  %v1068_v42 = vadd.f32 %v1036_v49, %v964_v29  ;;  %v892_v15 = vmul.f32 %v884_v47, %v2178_v46  ;;  %v965_v18 = vadd.f32 %v2172_v62, %v917_v19  ;;  %v900_v34 = vmul.f32 %v884_v47, %v2180_v33 }
 0x182   : > { %v1109_v37 = vperm.slane %v1093_v12, 2  ;;  %v1012_v9 = vmul.f32 %v1004_v1, %v2207_v14  ;;  %v1164_v45 = vadd.f32 %v1132_v59, %v1060_v63  ;;  %v1061_v50 = vadd.f32 %v1029_v3, %v957_v55 }
 0x183   : > { %v1172_v7 = vadd.f32 %v1140_v2, %v1068_v42  ;;  %v940_v40 = vadd.f32 %v2200_v13, %v892_v15  ;;  %v1069_v36 = vadd.f32 %v1037_v26, %v965_v18  ;;  %v948_v11 = vadd.f32 %v2202_v27, %v900_v34 }
 0x184   : > { %v1133_v24 = vmul.f32 %v1109_v37, %v2186_v6  ;;  %v1141_v38 = vmul.f32 %v1109_v37, %v2188_v17  ;;  %1499 = vmatmul.msk.bf16.vlgmr.msrb.gmra.mxu1 %vm687_vm0, %v2292_v58  ;;  %v1196_v62 = vmax.f32 %v1164_v45, 0.0  ;;  %v1020_v39 = vmul.f32 %v1004_v1, %v2244_v8 }
 0x185   : > { %v1204_v30 = vmax.f32 %v1172_v7, 0.0  ;;  %v1044_v5 = vadd.f32 %v1012_v9, %v940_v40  ;;  %v1116_v23 = vmul.f32 %v1108_v28, %v2246_v32  ;;  %v1124_v21 = vmul.f32 %v1108_v28, %v2249_v61 }
 0x186   : > { %v1165_v48 = vadd.f32 %v1133_v24, %v1061_v50  ;;  %v1173_v43 = vadd.f32 %v1141_v38, %v1069_v36  ;;  %v1052_v6 = vadd.f32 %v1020_v39, %v948_v11  ;;  %v893_v17 = vmul.f32 %v885_v22, %v2178_v46 }
 0x187   : > { %v1222_v25 = vpack.c.bf16 %v1204_v30, %v1196_v62  ;;  %v901_v44 = vmul.f32 %v885_v22, %v2180_v33  ;;  %v1148_v57 = vadd.f32 %v1116_v23, %v1044_v5  ;;  %v1013_v54 = vmul.f32 %v1005_v51, %v2207_v14 }
 0x188   : > { %v1197_v47 = vmax.f32 %v1165_v48, 0.0  ;;  %v1205_v41 = vmax.f32 %v1173_v43, 0.0  ;;  %v1156_v1 = vadd.f32 %v1124_v21, %v1052_v6  ;;  %v941_v52 = vadd.f32 %v2200_v13, %v893_v17 }
 0x189   : > { %1311 = vmatpush.bf16.msrb.mxu2 %v1222_v25  ;;  %v949_v4 = vadd.f32 %v2202_v27, %v901_v44  ;;  %v1021_v49 = vmul.f32 %v1005_v51, %v2244_v8  ;;  %v1180_v59 = vmax.f32 %v1148_v57, 0.0  ;;  %v1117_v2 = vmul.f32 %v1109_v37, %v2246_v32  ;;  %v1357_v51 = vpop.permute.xlu0 %1356 }
 0x18a   : > { %v1223_v28 = vpack.c.bf16 %v1205_v41, %v1197_v47  ;;  %v1188_v46 = vmax.f32 %v1156_v1, 0.0  ;;  %v1045_v35 = vadd.f32 %v1013_v54, %v941_v52  ;;  %v1125_v22 = vmul.f32 %v1109_v37, %v2249_v61 }
 0x18b   : > { %v1053_v33 = vadd.f32 %v1021_v49, %v949_v4  ;;  %v1361_v26 = vperm.slane %v1357_v51, %v826_v60 }
 0x18c   : > { %1324 = vmatpush.bf16.msrb.mxu3 %v1223_v28  ;;  %v1214_v53 = vpack.c.bf16 %v1188_v46, %v1180_v59  ;;  %v1149_v14 = vadd.f32 %v1117_v2, %v1045_v35 }
 0x18d   : > { %v1157_v29 = vadd.f32 %v1125_v22, %v1053_v33 }
 0x18e   : > { %1312 = vmatpush.bf16.msrb.mxu2 %v1214_v53  ;;  %v1181_v13 = vmax.f32 %v1149_v14, 0.0 }
 0x18f   : > { %v1189_v10 = vmax.f32 %v1157_v29, 0.0 }
 0x191   : > { %v1215_v27 = vpack.c.bf16 %v1189_v10, %v1181_v13  ;;  %1500 = vmatmul.msk.bf16.vlgmr.msrb.gmra.mxu2 %vm687_vm0, %v2292_v58 }
 0x193   : > { %1325 = vmatpush.bf16.msrb.mxu3 %v1215_v27 }
 0x196   : > { %1501 = vmatmul.msk.bf16.vlgmr.msrb.gmra.mxu3 %vm687_vm0, %v2292_v58 }
 0x1d7   : > { %v1236_v8 = vpop.f32.mrf.mxu0 }
 0x1dd   : > { %v1249_v32 = vpop.f32.mrf.mxu1 }
 0x1de   : > { %v1339_v61 = vrot.slane %v1249_v32, 4 }
 0x1df   : > { %v1238_v3 = vpop.f32.mrf.mxu0 }
 0x1e0   : > { %v1343_v19 = vsel %vm807_vm1, %v1236_v8, %v1339_v61 }
 0x1e1   : > { %v1351_v12 = vadd.f32 %v1343_v19, %v2198_v0 }
 0x1e3   : > { %v1363_v63 = vadd.f32 %v1361_v26, %v1351_v12 }
 0x1e5   : > { %1367 = vst [vmem:[%s282_s7] sm:$0x77] %v1363_v63  ;;  %v1251_v42 = vpop.f32.mrf.mxu1 }
 0x1f1   : > { %v1262_v58 = vpop.f32.mrf.mxu2 }
 0x1f5   : > { %v1275_v55 = vpop.f32.mrf.mxu3 }
 0x1f6   : > { %v1340_v15 = vrot.slane %v1275_v55, 4 }
 0x1f8   : > { %v1344_v18 = vsel %vm807_vm1, %v1262_v58, %v1340_v15 }
 0x1f9   : > { %v1352_v37 = vadd.f32 %v1344_v18, %v2223_v56  ;;  %v1264_v34 = vpop.f32.mrf.mxu2 }
 0x1fb   : > { %v1364_v9 = vadd.f32 %v1361_v26, %v1352_v37 }
 0x1fd   : > { %1368 = vst [vmem:[%s282_s7 + $0x8] sm:$0x77] %v1364_v9  ;;  %v1288_v31 = vpop.f32.mrf.mxu0  ;;  %v1277_v60 = vpop.f32.mrf.mxu3 }
 0x201   : > { %v1301_v0 = vpop.f32.mrf.mxu1 }
 0x202   : > { %v1341_v45 = vrot.slane %v1301_v0, 4 }
 0x204   : > { %v1345_v7 = vsel %vm807_vm1, %v1288_v31, %v1341_v45 }
 0x205   : > { %v1353_v50 = vadd.f32 %v1345_v7, %v2257_v16  ;;  %v1290_v40 = vpop.f32.mrf.mxu0 }
 0x207   : > { %v1365_v36 = vadd.f32 %v1361_v26, %v1353_v50 }
 0x209   : > { %1369 = vst [vmem:[%s282_s7 + $0x10] sm:$0x77] %v1365_v36  ;;  %v1303_v24 = vpop.f32.mrf.mxu1 }
 0x214   : > { %v1314_v38 = vpop.f32.mrf.mxu2 }
 0x219   : > { %v1327_v11 = vpop.f32.mrf.mxu3 }
 0x21a   : > { %v1342_v62 = vrot.slane %v1327_v11, 4 }
 0x21c   : > { %v1346_v56 = vsel %vm807_vm1, %v1314_v38, %v1342_v62  ;;  %v1316_v39 = vpop.f32.mrf.mxu2 }
 0x21d   : > { %v1354_v30 = vadd.f32 %v1346_v56, %v2279_v20 }
 0x21f   : > { %v1366_v5 = vadd.f32 %v1361_v26, %v1354_v30 }
 0x221   : > { %1370 = vst [vmem:[%s282_s7 + $0x18] sm:$0x77] %v1366_v5  ;;  %v1329_v48 = vpop.f32.mrf.mxu3 }
 0x222 PF: > { %s15_s20 = sadd.s32 1, %s1580_s20   ;;  %s2553_s18 = smov %s1576_s19 }
 0x223   : > { %p12_p5 = scmp.ge.s32.totalorder %s15_s20, 4   ;;  %s2554_s19 = smov %s2556_s21 }
 0x225   :  { %14 = sbr.rel (!%p12_p5) target bundleno = 2 (0x2), region = 75 }

</bundles_post_ra>
